<compile_context>
chip_gen: v5e
topology: v5e:2x2
jax: 0.10.0
libtpu: 0.0.40
codegen_flags: <defaults>
</compile_context>

<pallas_src>
import math

import jax
import jax.numpy as jnp
from jax import lax
from jax.experimental import pallas as pl
from jax.experimental.pallas import tpu as pltpu

# ---- static configuration (small, consistent with the module) ----
B = 2           # batch
S = 8           # seq_len
H = 32          # hidden_size
N_HEADS = 2
HEAD_DIM = H // N_HEADS
K_INTERESTS = 5
ATTN_SCALE_FACTOR = 2
POS_SCALING = float(HEAD_DIM * ATTN_SCALE_FACTOR) ** (-0.5)
LN_EPS = 1e-12


# ---------------- Pallas kernel (single grid step, whole batch) ----------------
def lmha_kernel(x_ref, pos_ref,
                wqkv_ref, bqkv_ref,
                wpos_ref, bpos_ref,
                theta_ref, wd_ref, prm_ref,
                out_ref):
    f32 = jnp.float32
    inv_sqrt_d = 1.0 / math.sqrt(HEAD_DIM)

    xf = x_ref[...].astype(f32)          # (B*S, H)
    pos = pos_ref[...].astype(f32)       # (S, H)

    # packed (1,H) params: rows = [bd, posln_g, posln_b, ln_g, ln_b]
    bd = prm_ref[0:1, :]
    posln_g, posln_b = prm_ref[1:2, :], prm_ref[2:3, :]
    ln_g, ln_b = prm_ref[3:4, :], prm_ref[4:5, :]

    def softmax_axis0(s):                # softmax over dim=-2 (the seq/query axis)
        m = jnp.max(s, axis=0, keepdims=True)
        e = jnp.exp(s - m)
        return e * pl.reciprocal(jnp.sum(e, axis=0, keepdims=True), approx=True)

    def layernorm(v, g, b):
        mu = jnp.mean(v, axis=-1, keepdims=True)
        var = jnp.mean((v - mu) ** 2, axis=-1, keepdims=True)
        return (v - mu) * lax.rsqrt(var + LN_EPS) * g + b

    # --- fused Q/K/V projection: one (B*S, H) @ (H, 3H) matmul ---
    qkv = jnp.dot(xf, wqkv_ref[...], preferred_element_type=f32) + bqkv_ref[...]
    q_all = qkv[:, 0:H]                  # (B*S, H)
    k_all = qkv[:, H:2 * H]
    v_all = qkv[:, 2 * H:3 * H]

    # --- interest-pooling mixing matrices, folded over batch ---
    d_k_all = jnp.dot(k_all, theta_ref[0], preferred_element_type=f32)   # (B*S, K)
    d_v_all = jnp.dot(v_all, theta_ref[1], preferred_element_type=f32)   # (B*S, K)

    # --- positional branch: batch independent, computed exactly once ---
    pln = layernorm(pos, posln_g, posln_b)                                # (S, H)
    pqk = jnp.dot(pln, wpos_ref[...], preferred_element_type=f32) + bpos_ref[...]
    pos_q = pqk[:, 0:H] * POS_SCALING
    pos_k = pqk[:, H:2 * H]
    pos_bias = []
    for h in range(N_HEADS):
        lo, hi = h * HEAD_DIM, (h + 1) * HEAD_DIM
        bias = lax.dot_general(pos_q[:, lo:hi], pos_k[:, lo:hi],
                               (((1,), (1,)), ((), ())),
                               preferred_element_type=f32) * inv_sqrt_d   # (S, S)
        pos_bias.append(softmax_axis0(bias))

    # --- per-batch attention (static unrolled, tiny shapes) ---
    ctx_rows = []
    for b in range(B):
        r0 = b * S
        q_b = q_all[r0:r0 + S]           # (S, H)
        k_b = k_all[r0:r0 + S]
        v_b = v_all[r0:r0 + S]

        # ItemToInterestAggregation: softmax over seq, pool over seq
        d_k = softmax_axis0(d_k_all[r0:r0 + S])                           # (S, K)
        d_v = softmax_axis0(d_v_all[r0:r0 + S])
        key_pool = lax.dot_general(d_k, k_b, (((0,), (0,)), ((), ())),
                                   preferred_element_type=f32)            # (K, H)
        val_pool = lax.dot_general(d_v, v_b, (((0,), (0,)), ((), ())),
                                   preferred_element_type=f32)            # (K, H)

        head_ctx = []
        for h in range(N_HEADS):
            lo, hi = h * HEAD_DIM, (h + 1) * HEAD_DIM
            # item attention: scores (S, K), softmax over query axis (dim=-2)
            scores = lax.dot_general(q_b[:, lo:hi], key_pool[:, lo:hi],
                                     (((1,), (1,)), ((), ())),
                                     preferred_element_type=f32) * inv_sqrt_d
            probs = softmax_axis0(scores)          # attn_dropout: identity (eval)
            ctx_h = jnp.dot(probs, val_pool[:, lo:hi],
                            preferred_element_type=f32)                   # (S, D)
            # positional attention (bias precomputed once per head)
            ctx_h = ctx_h + jnp.dot(pos_bias[h], v_b[:, lo:hi],
                                    preferred_element_type=f32)           # (S, D)
            head_ctx.append(ctx_h)
        ctx_rows.append(jnp.concatenate(head_ctx, axis=1))                # (S, H)

    ctx_all = jnp.concatenate(ctx_rows, axis=0)                           # (B*S, H)

    # single dense projection + residual + LayerNorm (out_dropout: identity)
    hidden = jnp.dot(ctx_all, wd_ref[...], preferred_element_type=f32) + bd
    out = layernorm(hidden + xf, ln_g, ln_b)
    out_ref[...] = out.astype(out_ref.dtype)


# ---------------- wrapper ----------------
def light_mha(x, pos_emb, p):
    assert x.shape == (B, S, H) and pos_emb.shape == (S, H)

    # pack operands: fused qkv / pos weights, stacked thetas, one small-param slab
    w_qkv = jnp.concatenate([p["wq"], p["wk"], p["wv"]], axis=1)          # (H, 3H)
    b_qkv = jnp.concatenate([p["bq"], p["bk"], p["bv"]], axis=1)          # (1, 3H)
    w_pos = jnp.concatenate([p["wpq"], p["wpk"]], axis=1)                 # (H, 2H)
    b_pos = jnp.concatenate([p["bpq"], p["bpk"]], axis=1)                 # (1, 2H)
    theta = jnp.stack([p["theta_k"], p["theta_v"]], axis=0)               # (2, H, K)
    prm = jnp.concatenate([p["bd"], p["posln_g"], p["posln_b"],
                           p["ln_g"], p["ln_b"]], axis=0)                 # (5, H)
    x_flat = x.reshape(B * S, H)

    def full_spec(shape):
        zeros = (0,) * len(shape)
        return pl.BlockSpec(shape, lambda i, _z=zeros: _z)

    in_specs = [
        full_spec((B * S, H)),                    # x (batch folded)
        full_spec((S, H)),                        # pos_emb
        full_spec((H, 3 * H)), full_spec((1, 3 * H)),   # W_qkv, b_qkv
        full_spec((H, 2 * H)), full_spec((1, 2 * H)),   # W_pos, b_pos
        full_spec((2, H, K_INTERESTS)),           # theta_k / theta_v stacked
        full_spec((H, H)),                        # W_dense
        full_spec((5, H)),                        # bd, posln_g, posln_b, ln_g, ln_b
    ]

    out = pl.pallas_call(
        lmha_kernel,
        out_shape=jax.ShapeDtypeStruct((B * S, H), x.dtype),
        grid_spec=pltpu.PrefetchScalarGridSpec(
            num_scalar_prefetch=0,
            grid=(1,),
            in_specs=in_specs,
            out_specs=pl.BlockSpec((B * S, H), lambda i: (0, 0)),
        ),
        compiler_params=pltpu.CompilerParams(
            dimension_semantics=("arbitrary",)),
        cost_estimate=pl.CostEstimate(
            flops=210_000, transcendentals=500, bytes_accessed=33_000),
    )(x_flat, pos_emb, w_qkv, b_qkv, w_pos, b_pos, theta, p["wd"], prm)
    return out.reshape(B, S, H)


# ---------------- pure-JAX reference (mirrors the PyTorch forward) ----------------
def reference(x, pos, p):
    def lin(t, w, b):
        return t @ w + b[0]

    def ln(t, g, b):
        mu = t.mean(-1, keepdims=True)
        var = ((t - mu) ** 2).mean(-1, keepdims=True)
        return (t - mu) / jnp.sqrt(var + LN_EPS) * g[0] + b[0]

    def split(t):  # (B', L, H) -> (B', nH, L, D)
        b_, l_, _ = t.shape
        return t.reshape(b_, l_, N_HEADS, HEAD_DIM).transpose(0, 2, 1, 3)

    q = lin(x, p["wq"], p["bq"])
    k = lin(x, p["wk"], p["bk"])
    v = lin(x, p["wv"], p["bv"])

    def pool(t, theta):
        d_mat = jax.nn.softmax(t @ theta, axis=-2)
        return jnp.einsum("nij,nik->nkj", t, d_mat)

    ql, kl, vl = split(q), split(pool(k, p["theta_k"])), split(pool(v, p["theta_v"]))
    scores = ql @ kl.transpose(0, 1, 3, 2) / math.sqrt(HEAD_DIM)
    probs = jax.nn.softmax(scores, axis=-2)
    ctx_item = probs @ vl

    vpos = split(v)
    pln = ln(pos, p["posln_g"], p["posln_b"])[None]
    pq = split(lin(pln, p["wpq"], p["bpq"])) * POS_SCALING
    pk = split(lin(pln, p["wpk"], p["bpk"]))
    bias = jax.nn.softmax(pq @ pk.transpose(0, 1, 3, 2) / math.sqrt(HEAD_DIM), axis=-2)
    ctx_pos = bias @ vpos

    ctx = (ctx_item + ctx_pos).transpose(0, 2, 1, 3).reshape(x.shape)
    hidden = lin(ctx, p["wd"], p["bd"])
    return ln(hidden + x, p["ln_g"], p["ln_b"])


def make_params(key):
    names_2d = ["wq", "wk", "wv", "wpq", "wpk", "wd"]
    keys = jax.random.split(key, 16)
    p = {}
    for i, n in enumerate(names_2d):
        p[n] = 0.1 * jax.random.normal(keys[i], (H, H), jnp.float32)
    p["theta_k"] = jax.random.normal(keys[6], (H, K_INTERESTS), jnp.float32)
    p["theta_v"] = jax.random.normal(keys[7], (H, K_INTERESTS), jnp.float32)
    for i, n in enumerate(["bq", "bk", "bv", "bpq", "bpk", "bd"]):
        p[n] = 0.05 * jax.random.normal(keys[8 + i], (1, H), jnp.float32)
    p["posln_g"] = jnp.ones((1, H), jnp.float32)
    p["posln_b"] = jnp.zeros((1, H), jnp.float32)
    p["ln_g"] = jnp.ones((1, H), jnp.float32)
    p["ln_b"] = jnp.zeros((1, H), jnp.float32)
    return p


if __name__ == "__main__":
    key = jax.random.PRNGKey(0)
    kx, kp, kw = jax.random.split(key, 3)
    x = jax.random.normal(kx, (B, S, H), jnp.float32)
    pos_emb = jax.random.normal(kp, (S, H), jnp.float32)
    params = make_params(kw)

    out = light_mha(x, pos_emb, params)
    out = jax.block_until_ready(out)

    ref = reference(x, pos_emb, params)
    assert out.shape == (B, S, H)
    # tolerance loosened slightly vs 1e-4 because the kernel uses the approx
    # (EUP) reciprocal for the softmax denominators.
    assert jnp.allclose(out, ref, atol=2e-3, rtol=2e-3), (
        float(jnp.max(jnp.abs(out - ref))))
    print("KERNEL_OK")
</pallas_src>

<mosaic_0001>
module attributes {stable_mosaic.version = 11 : i64} {
  func.func @lmha_kernel(%arg0: i32, %arg1: memref<16x32xf32, #tpu.memory_space<vmem>>, %arg2: memref<8x32xf32, #tpu.memory_space<vmem>>, %arg3: memref<32x96xf32, #tpu.memory_space<vmem>>, %arg4: memref<1x96xf32, #tpu.memory_space<vmem>>, %arg5: memref<32x64xf32, #tpu.memory_space<vmem>>, %arg6: memref<1x64xf32, #tpu.memory_space<vmem>>, %arg7: memref<2x32x5xf32, #tpu.memory_space<vmem>>, %arg8: memref<32x32xf32, #tpu.memory_space<vmem>>, %arg9: memref<5x32xf32, #tpu.memory_space<vmem>>, %arg10: memref<16x32xf32, #tpu.memory_space<vmem>>) attributes {dimension_semantics = [#tpu.dimension_semantics<arbitrary>], iteration_bounds = array<i64: 1>, scalar_prefetch = 0 : i64, scratch_operands = 0 : i64, tpu.core_type = #tpu.core_type<tc>, window_params = [{pipeline_mode = #tpu.pipeline_mode<synchronous>, transform_indices = @transform_0, window_bounds = array<i64: 16, 32>}, {pipeline_mode = #tpu.pipeline_mode<synchronous>, transform_indices = @transform_1, window_bounds = array<i64: 8, 32>}, {pipeline_mode = #tpu.pipeline_mode<synchronous>, transform_indices = @transform_2, window_bounds = array<i64: 32, 96>}, {pipeline_mode = #tpu.pipeline_mode<synchronous>, transform_indices = @transform_3, window_bounds = array<i64: 1, 96>}, {pipeline_mode = #tpu.pipeline_mode<synchronous>, transform_indices = @transform_4, window_bounds = array<i64: 32, 64>}, {pipeline_mode = #tpu.pipeline_mode<synchronous>, transform_indices = @transform_5, window_bounds = array<i64: 1, 64>}, {pipeline_mode = #tpu.pipeline_mode<synchronous>, transform_indices = @transform_6, window_bounds = array<i64: 2, 32, 5>}, {pipeline_mode = #tpu.pipeline_mode<synchronous>, transform_indices = @transform_7, window_bounds = array<i64: 32, 32>}, {pipeline_mode = #tpu.pipeline_mode<synchronous>, transform_indices = @transform_8, window_bounds = array<i64: 5, 32>}, {pipeline_mode = #tpu.pipeline_mode<synchronous>, transform_indices = @transform_9, window_bounds = array<i64: 16, 32>}]} {
    %c0 = arith.constant 0 : index
    %c0_0 = arith.constant 0 : index
    %0 = vector.load %arg1[%c0, %c0_0] : memref<16x32xf32, #tpu.memory_space<vmem>>, vector<16x32xf32>
    %c0_1 = arith.constant 0 : index
    %c0_2 = arith.constant 0 : index
    %1 = vector.load %arg2[%c0_1, %c0_2] : memref<8x32xf32, #tpu.memory_space<vmem>>, vector<8x32xf32>
    %c0_3 = arith.constant 0 : index
    %c0_4 = arith.constant 0 : index
    %2 = vector.load %arg9[%c0_3, %c0_4] : memref<5x32xf32, #tpu.memory_space<vmem>>, vector<1x32xf32>
    %c1 = arith.constant 1 : index
    %c0_5 = arith.constant 0 : index
    %3 = vector.load %arg9[%c1, %c0_5] : memref<5x32xf32, #tpu.memory_space<vmem>>, vector<1x32xf32>
    %c2 = arith.constant 2 : index
    %c0_6 = arith.constant 0 : index
    %4 = vector.load %arg9[%c2, %c0_6] : memref<5x32xf32, #tpu.memory_space<vmem>>, vector<1x32xf32>
    %c3 = arith.constant 3 : index
    %c0_7 = arith.constant 0 : index
    %5 = vector.load %arg9[%c3, %c0_7] : memref<5x32xf32, #tpu.memory_space<vmem>>, vector<1x32xf32>
    %c4 = arith.constant 4 : index
    %c0_8 = arith.constant 0 : index
    %6 = vector.load %arg9[%c4, %c0_8] : memref<5x32xf32, #tpu.memory_space<vmem>>, vector<1x32xf32>
    %c0_9 = arith.constant 0 : index
    %c0_10 = arith.constant 0 : index
    %7 = vector.load %arg3[%c0_9, %c0_10] : memref<32x96xf32, #tpu.memory_space<vmem>>, vector<32x96xf32>
    %cst = arith.constant dense<0.000000e+00> : vector<16x96xf32>
    %8 = tpu.matmul %0, %7, %cst {dimension_numbers = #tpu.dot_dimension_numbers<[1], [0], [0], [1], [0, 0, 1, 1], [], []>} : vector<16x32xf32>, vector<32x96xf32>, vector<16x96xf32> -> vector<16x96xf32>
    %c0_11 = arith.constant 0 : index
    %c0_12 = arith.constant 0 : index
    %9 = vector.load %arg4[%c0_11, %c0_12] : memref<1x96xf32, #tpu.memory_space<vmem>>, vector<1x96xf32>
    %10 = vector.broadcast %9 : vector<1x96xf32> to vector<16x96xf32>
    %11 = arith.addf %8, %10 : vector<16x96xf32>
    %12 = vector.extract_strided_slice %11 {offsets = [0, 0], sizes = [16, 32], strides = [1, 1]} : vector<16x96xf32> to vector<16x32xf32>
    %13 = vector.extract_strided_slice %11 {offsets = [0, 32], sizes = [16, 32], strides = [1, 1]} : vector<16x96xf32> to vector<16x32xf32>
    %14 = vector.extract_strided_slice %11 {offsets = [0, 64], sizes = [16, 32], strides = [1, 1]} : vector<16x96xf32> to vector<16x32xf32>
    %c0_13 = arith.constant 0 : index
    %c0_14 = arith.constant 0 : index
    %c0_15 = arith.constant 0 : index
    %15 = vector.load %arg7[%c0_13, %c0_14, %c0_15] : memref<2x32x5xf32, #tpu.memory_space<vmem>>, vector<1x32x5xf32>
    %16 = vector.shape_cast %15 : vector<1x32x5xf32> to vector<32x5xf32>
    %cst_16 = arith.constant dense<0.000000e+00> : vector<16x5xf32>
    %17 = tpu.matmul %13, %16, %cst_16 {dimension_numbers = #tpu.dot_dimension_numbers<[1], [0], [0], [1], [0, 0, 1, 1], [], []>} : vector<16x32xf32>, vector<32x5xf32>, vector<16x5xf32> -> vector<16x5xf32>
    %c1_17 = arith.constant 1 : index
    %c0_18 = arith.constant 0 : index
    %c0_19 = arith.constant 0 : index
    %18 = vector.load %arg7[%c1_17, %c0_18, %c0_19] : memref<2x32x5xf32, #tpu.memory_space<vmem>>, vector<1x32x5xf32>
    %19 = vector.shape_cast %18 : vector<1x32x5xf32> to vector<32x5xf32>
    %cst_20 = arith.constant dense<0.000000e+00> : vector<16x5xf32>
    %20 = tpu.matmul %14, %19, %cst_20 {dimension_numbers = #tpu.dot_dimension_numbers<[1], [0], [0], [1], [0, 0, 1, 1], [], []>} : vector<16x32xf32>, vector<32x5xf32>, vector<16x5xf32> -> vector<16x5xf32>
    %cst_21 = arith.constant dense<0.000000e+00> : vector<8xf32>
    %21 = vector.multi_reduction <add>, %1, %cst_21 [1] : vector<8x32xf32> to vector<8xf32>
    %22 = vector.shape_cast %21 : vector<8xf32> to vector<8x1xf32>
    %cst_22 = arith.constant 3.200000e+01 : f32
    %23 = vector.broadcast %cst_22 : f32 to vector<8x1xf32>
    %24 = arith.divf %22, %23 : vector<8x1xf32>
    %25 = vector.broadcast %24 : vector<8x1xf32> to vector<8x32xf32>
    %26 = arith.subf %1, %25 : vector<8x32xf32>
    %27 = arith.mulf %26, %26 : vector<8x32xf32>
    %cst_23 = arith.constant dense<0.000000e+00> : vector<8xf32>
    %28 = vector.multi_reduction <add>, %27, %cst_23 [1] : vector<8x32xf32> to vector<8xf32>
    %29 = vector.shape_cast %28 : vector<8xf32> to vector<8x1xf32>
    %cst_24 = arith.constant 3.200000e+01 : f32
    %30 = vector.broadcast %cst_24 : f32 to vector<8x1xf32>
    %31 = arith.divf %29, %30 : vector<8x1xf32>
    %32 = vector.broadcast %24 : vector<8x1xf32> to vector<8x32xf32>
    %33 = arith.subf %1, %32 : vector<8x32xf32>
    %cst_25 = arith.constant 9.99999996E-13 : f32
    %34 = vector.broadcast %cst_25 : f32 to vector<8x1xf32>
    %35 = arith.addf %31, %34 : vector<8x1xf32>
    %36 = math.rsqrt %35 : vector<8x1xf32>
    %37 = vector.broadcast %36 : vector<8x1xf32> to vector<8x32xf32>
    %38 = arith.mulf %33, %37 : vector<8x32xf32>
    %39 = vector.broadcast %3 : vector<1x32xf32> to vector<8x32xf32>
    %40 = arith.mulf %38, %39 : vector<8x32xf32>
    %41 = vector.broadcast %4 : vector<1x32xf32> to vector<8x32xf32>
    %42 = arith.addf %40, %41 : vector<8x32xf32>
    %c0_26 = arith.constant 0 : index
    %c0_27 = arith.constant 0 : index
    %43 = vector.load %arg5[%c0_26, %c0_27] : memref<32x64xf32, #tpu.memory_space<vmem>>, vector<32x64xf32>
    %cst_28 = arith.constant dense<0.000000e+00> : vector<8x64xf32>
    %44 = tpu.matmul %42, %43, %cst_28 {dimension_numbers = #tpu.dot_dimension_numbers<[1], [0], [0], [1], [0, 0, 1, 1], [], []>} : vector<8x32xf32>, vector<32x64xf32>, vector<8x64xf32> -> vector<8x64xf32>
    %c0_29 = arith.constant 0 : index
    %c0_30 = arith.constant 0 : index
    %45 = vector.load %arg6[%c0_29, %c0_30] : memref<1x64xf32, #tpu.memory_space<vmem>>, vector<1x64xf32>
    %46 = vector.broadcast %45 : vector<1x64xf32> to vector<8x64xf32>
    %47 = arith.addf %44, %46 : vector<8x64xf32>
    %48 = vector.extract_strided_slice %47 {offsets = [0, 0], sizes = [8, 32], strides = [1, 1]} : vector<8x64xf32> to vector<8x32xf32>
    %cst_31 = arith.constant 0.176776692 : f32
    %49 = vector.broadcast %cst_31 : f32 to vector<8x32xf32>
    %50 = arith.mulf %48, %49 : vector<8x32xf32>
    %51 = vector.extract_strided_slice %47 {offsets = [0, 32], sizes = [8, 32], strides = [1, 1]} : vector<8x64xf32> to vector<8x32xf32>
    %52 = vector.extract_strided_slice %50 {offsets = [0, 0], sizes = [8, 16], strides = [1, 1]} : vector<8x32xf32> to vector<8x16xf32>
    %53 = vector.extract_strided_slice %51 {offsets = [0, 0], sizes = [8, 16], strides = [1, 1]} : vector<8x32xf32> to vector<8x16xf32>
    %cst_32 = arith.constant dense<0.000000e+00> : vector<8x8xf32>
    %54 = tpu.matmul %52, %53, %cst_32 {dimension_numbers = #tpu.dot_dimension_numbers<[1], [1], [0], [0], [0, 0, 1, 0], [], []>} : vector<8x16xf32>, vector<8x16xf32>, vector<8x8xf32> -> vector<8x8xf32>
    %cst_33 = arith.constant 2.500000e-01 : f32
    %55 = vector.broadcast %cst_33 : f32 to vector<8x8xf32>
    %56 = arith.mulf %54, %55 : vector<8x8xf32>
    %cst_34 = arith.constant dense<0xFF800000> : vector<8xf32>
    %57 = vector.multi_reduction <maximumf>, %56, %cst_34 [0] : vector<8x8xf32> to vector<8xf32>
    %58 = vector.shape_cast %57 : vector<8xf32> to vector<1x8xf32>
    %59 = vector.broadcast %58 : vector<1x8xf32> to vector<8x8xf32>
    %60 = arith.subf %56, %59 : vector<8x8xf32>
    %61 = math.exp %60 : vector<8x8xf32>
    %cst_35 = arith.constant dense<0.000000e+00> : vector<8xf32>
    %62 = vector.multi_reduction <add>, %61, %cst_35 [0] : vector<8x8xf32> to vector<8xf32>
    %63 = vector.shape_cast %62 : vector<8xf32> to vector<1x8xf32>
    %64 = tpu.reciprocal %63 {approx = true} : vector<1x8xf32> -> vector<1x8xf32>
    %65 = vector.broadcast %64 : vector<1x8xf32> to vector<8x8xf32>
    %66 = arith.mulf %61, %65 : vector<8x8xf32>
    %67 = vector.extract_strided_slice %50 {offsets = [0, 16], sizes = [8, 16], strides = [1, 1]} : vector<8x32xf32> to vector<8x16xf32>
    %68 = vector.extract_strided_slice %51 {offsets = [0, 16], sizes = [8, 16], strides = [1, 1]} : vector<8x32xf32> to vector<8x16xf32>
    %cst_36 = arith.constant dense<0.000000e+00> : vector<8x8xf32>
    %69 = tpu.matmul %67, %68, %cst_36 {dimension_numbers = #tpu.dot_dimension_numbers<[1], [1], [0], [0], [0, 0, 1, 0], [], []>} : vector<8x16xf32>, vector<8x16xf32>, vector<8x8xf32> -> vector<8x8xf32>
    %cst_37 = arith.constant 2.500000e-01 : f32
    %70 = vector.broadcast %cst_37 : f32 to vector<8x8xf32>
    %71 = arith.mulf %69, %70 : vector<8x8xf32>
    %cst_38 = arith.constant dense<0xFF800000> : vector<8xf32>
    %72 = vector.multi_reduction <maximumf>, %71, %cst_38 [0] : vector<8x8xf32> to vector<8xf32>
    %73 = vector.shape_cast %72 : vector<8xf32> to vector<1x8xf32>
    %74 = vector.broadcast %73 : vector<1x8xf32> to vector<8x8xf32>
    %75 = arith.subf %71, %74 : vector<8x8xf32>
    %76 = math.exp %75 : vector<8x8xf32>
    %cst_39 = arith.constant dense<0.000000e+00> : vector<8xf32>
    %77 = vector.multi_reduction <add>, %76, %cst_39 [0] : vector<8x8xf32> to vector<8xf32>
    %78 = vector.shape_cast %77 : vector<8xf32> to vector<1x8xf32>
    %79 = tpu.reciprocal %78 {approx = true} : vector<1x8xf32> -> vector<1x8xf32>
    %80 = vector.broadcast %79 : vector<1x8xf32> to vector<8x8xf32>
    %81 = arith.mulf %76, %80 : vector<8x8xf32>
    %82 = vector.extract_strided_slice %12 {offsets = [0, 0], sizes = [8, 32], strides = [1, 1]} : vector<16x32xf32> to vector<8x32xf32>
    %83 = vector.extract_strided_slice %13 {offsets = [0, 0], sizes = [8, 32], strides = [1, 1]} : vector<16x32xf32> to vector<8x32xf32>
    %84 = vector.extract_strided_slice %14 {offsets = [0, 0], sizes = [8, 32], strides = [1, 1]} : vector<16x32xf32> to vector<8x32xf32>
    %85 = vector.extract_strided_slice %17 {offsets = [0, 0], sizes = [8, 5], strides = [1, 1]} : vector<16x5xf32> to vector<8x5xf32>
    %cst_40 = arith.constant dense<0xFF800000> : vector<5xf32>
    %86 = vector.multi_reduction <maximumf>, %85, %cst_40 [0] : vector<8x5xf32> to vector<5xf32>
    %87 = vector.shape_cast %86 : vector<5xf32> to vector<1x5xf32>
    %88 = vector.broadcast %87 : vector<1x5xf32> to vector<8x5xf32>
    %89 = arith.subf %85, %88 : vector<8x5xf32>
    %90 = math.exp %89 : vector<8x5xf32>
    %cst_41 = arith.constant dense<0.000000e+00> : vector<5xf32>
    %91 = vector.multi_reduction <add>, %90, %cst_41 [0] : vector<8x5xf32> to vector<5xf32>
    %92 = vector.shape_cast %91 : vector<5xf32> to vector<1x5xf32>
    %93 = tpu.reciprocal %92 {approx = true} : vector<1x5xf32> -> vector<1x5xf32>
    %94 = vector.broadcast %93 : vector<1x5xf32> to vector<8x5xf32>
    %95 = arith.mulf %90, %94 : vector<8x5xf32>
    %96 = vector.extract_strided_slice %20 {offsets = [0, 0], sizes = [8, 5], strides = [1, 1]} : vector<16x5xf32> to vector<8x5xf32>
    %cst_42 = arith.constant dense<0xFF800000> : vector<5xf32>
    %97 = vector.multi_reduction <maximumf>, %96, %cst_42 [0] : vector<8x5xf32> to vector<5xf32>
    %98 = vector.shape_cast %97 : vector<5xf32> to vector<1x5xf32>
    %99 = vector.broadcast %98 : vector<1x5xf32> to vector<8x5xf32>
    %100 = arith.subf %96, %99 : vector<8x5xf32>
    %101 = math.exp %100 : vector<8x5xf32>
    %cst_43 = arith.constant dense<0.000000e+00> : vector<5xf32>
    %102 = vector.multi_reduction <add>, %101, %cst_43 [0] : vector<8x5xf32> to vector<5xf32>
    %103 = vector.shape_cast %102 : vector<5xf32> to vector<1x5xf32>
    %104 = tpu.reciprocal %103 {approx = true} : vector<1x5xf32> -> vector<1x5xf32>
    %105 = vector.broadcast %104 : vector<1x5xf32> to vector<8x5xf32>
    %106 = arith.mulf %101, %105 : vector<8x5xf32>
    %cst_44 = arith.constant dense<0.000000e+00> : vector<5x32xf32>
    %107 = tpu.matmul %95, %83, %cst_44 {dimension_numbers = #tpu.dot_dimension_numbers<[0], [0], [1], [1], [0, 1, 1, 1], [], []>} : vector<8x5xf32>, vector<8x32xf32>, vector<5x32xf32> -> vector<5x32xf32>
    %cst_45 = arith.constant dense<0.000000e+00> : vector<5x32xf32>
    %108 = tpu.matmul %106, %84, %cst_45 {dimension_numbers = #tpu.dot_dimension_numbers<[0], [0], [1], [1], [0, 1, 1, 1], [], []>} : vector<8x5xf32>, vector<8x32xf32>, vector<5x32xf32> -> vector<5x32xf32>
    %109 = vector.extract_strided_slice %82 {offsets = [0, 0], sizes = [8, 16], strides = [1, 1]} : vector<8x32xf32> to vector<8x16xf32>
    %110 = vector.extract_strided_slice %107 {offsets = [0, 0], sizes = [5, 16], strides = [1, 1]} : vector<5x32xf32> to vector<5x16xf32>
    %cst_46 = arith.constant dense<0.000000e+00> : vector<8x5xf32>
    %111 = tpu.matmul %109, %110, %cst_46 {dimension_numbers = #tpu.dot_dimension_numbers<[1], [1], [0], [0], [0, 0, 1, 0], [], []>} : vector<8x16xf32>, vector<5x16xf32>, vector<8x5xf32> -> vector<8x5xf32>
    %cst_47 = arith.constant 2.500000e-01 : f32
    %112 = vector.broadcast %cst_47 : f32 to vector<8x5xf32>
    %113 = arith.mulf %111, %112 : vector<8x5xf32>
    %cst_48 = arith.constant dense<0xFF800000> : vector<5xf32>
    %114 = vector.multi_reduction <maximumf>, %113, %cst_48 [0] : vector<8x5xf32> to vector<5xf32>
    %115 = vector.shape_cast %114 : vector<5xf32> to vector<1x5xf32>
    %116 = vector.broadcast %115 : vector<1x5xf32> to vector<8x5xf32>
    %117 = arith.subf %113, %116 : vector<8x5xf32>
    %118 = math.exp %117 : vector<8x5xf32>
    %cst_49 = arith.constant dense<0.000000e+00> : vector<5xf32>
    %119 = vector.multi_reduction <add>, %118, %cst_49 [0] : vector<8x5xf32> to vector<5xf32>
    %120 = vector.shape_cast %119 : vector<5xf32> to vector<1x5xf32>
    %121 = tpu.reciprocal %120 {approx = true} : vector<1x5xf32> -> vector<1x5xf32>
    %122 = vector.broadcast %121 : vector<1x5xf32> to vector<8x5xf32>
    %123 = arith.mulf %118, %122 : vector<8x5xf32>
    %124 = vector.extract_strided_slice %108 {offsets = [0, 0], sizes = [5, 16], strides = [1, 1]} : vector<5x32xf32> to vector<5x16xf32>
    %cst_50 = arith.constant dense<0.000000e+00> : vector<8x16xf32>
    %125 = tpu.matmul %123, %124, %cst_50 {dimension_numbers = #tpu.dot_dimension_numbers<[1], [0], [0], [1], [0, 0, 1, 1], [], []>} : vector<8x5xf32>, vector<5x16xf32>, vector<8x16xf32> -> vector<8x16xf32>
    %126 = vector.extract_strided_slice %84 {offsets = [0, 0], sizes = [8, 16], strides = [1, 1]} : vector<8x32xf32> to vector<8x16xf32>
    %cst_51 = arith.constant dense<0.000000e+00> : vector<8x16xf32>
    %127 = tpu.matmul %66, %126, %cst_51 {dimension_numbers = #tpu.dot_dimension_numbers<[1], [0], [0], [1], [0, 0, 1, 1], [], []>} : vector<8x8xf32>, vector<8x16xf32>, vector<8x16xf32> -> vector<8x16xf32>
    %128 = arith.addf %125, %127 : vector<8x16xf32>
    %129 = vector.extract_strided_slice %82 {offsets = [0, 16], sizes = [8, 16], strides = [1, 1]} : vector<8x32xf32> to vector<8x16xf32>
    %130 = vector.extract_strided_slice %107 {offsets = [0, 16], sizes = [5, 16], strides = [1, 1]} : vector<5x32xf32> to vector<5x16xf32>
    %cst_52 = arith.constant dense<0.000000e+00> : vector<8x5xf32>
    %131 = tpu.matmul %129, %130, %cst_52 {dimension_numbers = #tpu.dot_dimension_numbers<[1], [1], [0], [0], [0, 0, 1, 0], [], []>} : vector<8x16xf32>, vector<5x16xf32>, vector<8x5xf32> -> vector<8x5xf32>
    %cst_53 = arith.constant 2.500000e-01 : f32
    %132 = vector.broadcast %cst_53 : f32 to vector<8x5xf32>
    %133 = arith.mulf %131, %132 : vector<8x5xf32>
    %cst_54 = arith.constant dense<0xFF800000> : vector<5xf32>
    %134 = vector.multi_reduction <maximumf>, %133, %cst_54 [0] : vector<8x5xf32> to vector<5xf32>
    %135 = vector.shape_cast %134 : vector<5xf32> to vector<1x5xf32>
    %136 = vector.broadcast %135 : vector<1x5xf32> to vector<8x5xf32>
    %137 = arith.subf %133, %136 : vector<8x5xf32>
    %138 = math.exp %137 : vector<8x5xf32>
    %cst_55 = arith.constant dense<0.000000e+00> : vector<5xf32>
    %139 = vector.multi_reduction <add>, %138, %cst_55 [0] : vector<8x5xf32> to vector<5xf32>
    %140 = vector.shape_cast %139 : vector<5xf32> to vector<1x5xf32>
    %141 = tpu.reciprocal %140 {approx = true} : vector<1x5xf32> -> vector<1x5xf32>
    %142 = vector.broadcast %141 : vector<1x5xf32> to vector<8x5xf32>
    %143 = arith.mulf %138, %142 : vector<8x5xf32>
    %144 = vector.extract_strided_slice %108 {offsets = [0, 16], sizes = [5, 16], strides = [1, 1]} : vector<5x32xf32> to vector<5x16xf32>
    %cst_56 = arith.constant dense<0.000000e+00> : vector<8x16xf32>
    %145 = tpu.matmul %143, %144, %cst_56 {dimension_numbers = #tpu.dot_dimension_numbers<[1], [0], [0], [1], [0, 0, 1, 1], [], []>} : vector<8x5xf32>, vector<5x16xf32>, vector<8x16xf32> -> vector<8x16xf32>
    %146 = vector.extract_strided_slice %84 {offsets = [0, 16], sizes = [8, 16], strides = [1, 1]} : vector<8x32xf32> to vector<8x16xf32>
    %cst_57 = arith.constant dense<0.000000e+00> : vector<8x16xf32>
    %147 = tpu.matmul %81, %146, %cst_57 {dimension_numbers = #tpu.dot_dimension_numbers<[1], [0], [0], [1], [0, 0, 1, 1], [], []>} : vector<8x8xf32>, vector<8x16xf32>, vector<8x16xf32> -> vector<8x16xf32>
    %148 = arith.addf %145, %147 : vector<8x16xf32>
    %149 = tpu.concatenate %128, %148 in 1 : vector<8x16xf32>, vector<8x16xf32> -> vector<8x32xf32>
    %150 = vector.extract_strided_slice %12 {offsets = [8, 0], sizes = [8, 32], strides = [1, 1]} : vector<16x32xf32> to vector<8x32xf32>
    %151 = vector.extract_strided_slice %13 {offsets = [8, 0], sizes = [8, 32], strides = [1, 1]} : vector<16x32xf32> to vector<8x32xf32>
    %152 = vector.extract_strided_slice %14 {offsets = [8, 0], sizes = [8, 32], strides = [1, 1]} : vector<16x32xf32> to vector<8x32xf32>
    %153 = vector.extract_strided_slice %17 {offsets = [8, 0], sizes = [8, 5], strides = [1, 1]} : vector<16x5xf32> to vector<8x5xf32>
    %cst_58 = arith.constant dense<0xFF800000> : vector<5xf32>
    %154 = vector.multi_reduction <maximumf>, %153, %cst_58 [0] : vector<8x5xf32> to vector<5xf32>
    %155 = vector.shape_cast %154 : vector<5xf32> to vector<1x5xf32>
    %156 = vector.broadcast %155 : vector<1x5xf32> to vector<8x5xf32>
    %157 = arith.subf %153, %156 : vector<8x5xf32>
    %158 = math.exp %157 : vector<8x5xf32>
    %cst_59 = arith.constant dense<0.000000e+00> : vector<5xf32>
    %159 = vector.multi_reduction <add>, %158, %cst_59 [0] : vector<8x5xf32> to vector<5xf32>
    %160 = vector.shape_cast %159 : vector<5xf32> to vector<1x5xf32>
    %161 = tpu.reciprocal %160 {approx = true} : vector<1x5xf32> -> vector<1x5xf32>
    %162 = vector.broadcast %161 : vector<1x5xf32> to vector<8x5xf32>
    %163 = arith.mulf %158, %162 : vector<8x5xf32>
    %164 = vector.extract_strided_slice %20 {offsets = [8, 0], sizes = [8, 5], strides = [1, 1]} : vector<16x5xf32> to vector<8x5xf32>
    %cst_60 = arith.constant dense<0xFF800000> : vector<5xf32>
    %165 = vector.multi_reduction <maximumf>, %164, %cst_60 [0] : vector<8x5xf32> to vector<5xf32>
    %166 = vector.shape_cast %165 : vector<5xf32> to vector<1x5xf32>
    %167 = vector.broadcast %166 : vector<1x5xf32> to vector<8x5xf32>
    %168 = arith.subf %164, %167 : vector<8x5xf32>
    %169 = math.exp %168 : vector<8x5xf32>
    %cst_61 = arith.constant dense<0.000000e+00> : vector<5xf32>
    %170 = vector.multi_reduction <add>, %169, %cst_61 [0] : vector<8x5xf32> to vector<5xf32>
    %171 = vector.shape_cast %170 : vector<5xf32> to vector<1x5xf32>
    %172 = tpu.reciprocal %171 {approx = true} : vector<1x5xf32> -> vector<1x5xf32>
    %173 = vector.broadcast %172 : vector<1x5xf32> to vector<8x5xf32>
    %174 = arith.mulf %169, %173 : vector<8x5xf32>
    %cst_62 = arith.constant dense<0.000000e+00> : vector<5x32xf32>
    %175 = tpu.matmul %163, %151, %cst_62 {dimension_numbers = #tpu.dot_dimension_numbers<[0], [0], [1], [1], [0, 1, 1, 1], [], []>} : vector<8x5xf32>, vector<8x32xf32>, vector<5x32xf32> -> vector<5x32xf32>
    %cst_63 = arith.constant dense<0.000000e+00> : vector<5x32xf32>
    %176 = tpu.matmul %174, %152, %cst_63 {dimension_numbers = #tpu.dot_dimension_numbers<[0], [0], [1], [1], [0, 1, 1, 1], [], []>} : vector<8x5xf32>, vector<8x32xf32>, vector<5x32xf32> -> vector<5x32xf32>
    %177 = vector.extract_strided_slice %150 {offsets = [0, 0], sizes = [8, 16], strides = [1, 1]} : vector<8x32xf32> to vector<8x16xf32>
    %178 = vector.extract_strided_slice %175 {offsets = [0, 0], sizes = [5, 16], strides = [1, 1]} : vector<5x32xf32> to vector<5x16xf32>
    %cst_64 = arith.constant dense<0.000000e+00> : vector<8x5xf32>
    %179 = tpu.matmul %177, %178, %cst_64 {dimension_numbers = #tpu.dot_dimension_numbers<[1], [1], [0], [0], [0, 0, 1, 0], [], []>} : vector<8x16xf32>, vector<5x16xf32>, vector<8x5xf32> -> vector<8x5xf32>
    %cst_65 = arith.constant 2.500000e-01 : f32
    %180 = vector.broadcast %cst_65 : f32 to vector<8x5xf32>
    %181 = arith.mulf %179, %180 : vector<8x5xf32>
    %cst_66 = arith.constant dense<0xFF800000> : vector<5xf32>
    %182 = vector.multi_reduction <maximumf>, %181, %cst_66 [0] : vector<8x5xf32> to vector<5xf32>
    %183 = vector.shape_cast %182 : vector<5xf32> to vector<1x5xf32>
    %184 = vector.broadcast %183 : vector<1x5xf32> to vector<8x5xf32>
    %185 = arith.subf %181, %184 : vector<8x5xf32>
    %186 = math.exp %185 : vector<8x5xf32>
    %cst_67 = arith.constant dense<0.000000e+00> : vector<5xf32>
    %187 = vector.multi_reduction <add>, %186, %cst_67 [0] : vector<8x5xf32> to vector<5xf32>
    %188 = vector.shape_cast %187 : vector<5xf32> to vector<1x5xf32>
    %189 = tpu.reciprocal %188 {approx = true} : vector<1x5xf32> -> vector<1x5xf32>
    %190 = vector.broadcast %189 : vector<1x5xf32> to vector<8x5xf32>
    %191 = arith.mulf %186, %190 : vector<8x5xf32>
    %192 = vector.extract_strided_slice %176 {offsets = [0, 0], sizes = [5, 16], strides = [1, 1]} : vector<5x32xf32> to vector<5x16xf32>
    %cst_68 = arith.constant dense<0.000000e+00> : vector<8x16xf32>
    %193 = tpu.matmul %191, %192, %cst_68 {dimension_numbers = #tpu.dot_dimension_numbers<[1], [0], [0], [1], [0, 0, 1, 1], [], []>} : vector<8x5xf32>, vector<5x16xf32>, vector<8x16xf32> -> vector<8x16xf32>
    %194 = vector.extract_strided_slice %152 {offsets = [0, 0], sizes = [8, 16], strides = [1, 1]} : vector<8x32xf32> to vector<8x16xf32>
    %cst_69 = arith.constant dense<0.000000e+00> : vector<8x16xf32>
    %195 = tpu.matmul %66, %194, %cst_69 {dimension_numbers = #tpu.dot_dimension_numbers<[1], [0], [0], [1], [0, 0, 1, 1], [], []>} : vector<8x8xf32>, vector<8x16xf32>, vector<8x16xf32> -> vector<8x16xf32>
    %196 = arith.addf %193, %195 : vector<8x16xf32>
    %197 = vector.extract_strided_slice %150 {offsets = [0, 16], sizes = [8, 16], strides = [1, 1]} : vector<8x32xf32> to vector<8x16xf32>
    %198 = vector.extract_strided_slice %175 {offsets = [0, 16], sizes = [5, 16], strides = [1, 1]} : vector<5x32xf32> to vector<5x16xf32>
    %cst_70 = arith.constant dense<0.000000e+00> : vector<8x5xf32>
    %199 = tpu.matmul %197, %198, %cst_70 {dimension_numbers = #tpu.dot_dimension_numbers<[1], [1], [0], [0], [0, 0, 1, 0], [], []>} : vector<8x16xf32>, vector<5x16xf32>, vector<8x5xf32> -> vector<8x5xf32>
    %cst_71 = arith.constant 2.500000e-01 : f32
    %200 = vector.broadcast %cst_71 : f32 to vector<8x5xf32>
    %201 = arith.mulf %199, %200 : vector<8x5xf32>
    %cst_72 = arith.constant dense<0xFF800000> : vector<5xf32>
    %202 = vector.multi_reduction <maximumf>, %201, %cst_72 [0] : vector<8x5xf32> to vector<5xf32>
    %203 = vector.shape_cast %202 : vector<5xf32> to vector<1x5xf32>
    %204 = vector.broadcast %203 : vector<1x5xf32> to vector<8x5xf32>
    %205 = arith.subf %201, %204 : vector<8x5xf32>
    %206 = math.exp %205 : vector<8x5xf32>
    %cst_73 = arith.constant dense<0.000000e+00> : vector<5xf32>
    %207 = vector.multi_reduction <add>, %206, %cst_73 [0] : vector<8x5xf32> to vector<5xf32>
    %208 = vector.shape_cast %207 : vector<5xf32> to vector<1x5xf32>
    %209 = tpu.reciprocal %208 {approx = true} : vector<1x5xf32> -> vector<1x5xf32>
    %210 = vector.broadcast %209 : vector<1x5xf32> to vector<8x5xf32>
    %211 = arith.mulf %206, %210 : vector<8x5xf32>
    %212 = vector.extract_strided_slice %176 {offsets = [0, 16], sizes = [5, 16], strides = [1, 1]} : vector<5x32xf32> to vector<5x16xf32>
    %cst_74 = arith.constant dense<0.000000e+00> : vector<8x16xf32>
    %213 = tpu.matmul %211, %212, %cst_74 {dimension_numbers = #tpu.dot_dimension_numbers<[1], [0], [0], [1], [0, 0, 1, 1], [], []>} : vector<8x5xf32>, vector<5x16xf32>, vector<8x16xf32> -> vector<8x16xf32>
    %214 = vector.extract_strided_slice %152 {offsets = [0, 16], sizes = [8, 16], strides = [1, 1]} : vector<8x32xf32> to vector<8x16xf32>
    %cst_75 = arith.constant dense<0.000000e+00> : vector<8x16xf32>
    %215 = tpu.matmul %81, %214, %cst_75 {dimension_numbers = #tpu.dot_dimension_numbers<[1], [0], [0], [1], [0, 0, 1, 1], [], []>} : vector<8x8xf32>, vector<8x16xf32>, vector<8x16xf32> -> vector<8x16xf32>
    %216 = arith.addf %213, %215 : vector<8x16xf32>
    %217 = tpu.concatenate %196, %216 in 1 : vector<8x16xf32>, vector<8x16xf32> -> vector<8x32xf32>
    %218 = tpu.concatenate %149, %217 in 0 : vector<8x32xf32>, vector<8x32xf32> -> vector<16x32xf32>
    %c0_76 = arith.constant 0 : index
    %c0_77 = arith.constant 0 : index
    %219 = vector.load %arg8[%c0_76, %c0_77] : memref<32x32xf32, #tpu.memory_space<vmem>>, vector<32x32xf32>
    %cst_78 = arith.constant dense<0.000000e+00> : vector<16x32xf32>
    %220 = tpu.matmul %218, %219, %cst_78 {dimension_numbers = #tpu.dot_dimension_numbers<[1], [0], [0], [1], [0, 0, 1, 1], [], []>} : vector<16x32xf32>, vector<32x32xf32>, vector<16x32xf32> -> vector<16x32xf32>
    %221 = vector.broadcast %2 : vector<1x32xf32> to vector<16x32xf32>
    %222 = arith.addf %220, %221 : vector<16x32xf32>
    %223 = arith.addf %222, %0 : vector<16x32xf32>
    %cst_79 = arith.constant dense<0.000000e+00> : vector<16xf32>
    %224 = vector.multi_reduction <add>, %223, %cst_79 [1] : vector<16x32xf32> to vector<16xf32>
    %225 = vector.shape_cast %224 : vector<16xf32> to vector<16x1xf32>
    %cst_80 = arith.constant 3.200000e+01 : f32
    %226 = vector.broadcast %cst_80 : f32 to vector<16x1xf32>
    %227 = arith.divf %225, %226 : vector<16x1xf32>
    %228 = vector.broadcast %227 : vector<16x1xf32> to vector<16x32xf32>
    %229 = arith.subf %223, %228 : vector<16x32xf32>
    %230 = arith.mulf %229, %229 : vector<16x32xf32>
    %cst_81 = arith.constant dense<0.000000e+00> : vector<16xf32>
    %231 = vector.multi_reduction <add>, %230, %cst_81 [1] : vector<16x32xf32> to vector<16xf32>
    %232 = vector.shape_cast %231 : vector<16xf32> to vector<16x1xf32>
    %cst_82 = arith.constant 3.200000e+01 : f32
    %233 = vector.broadcast %cst_82 : f32 to vector<16x1xf32>
    %234 = arith.divf %232, %233 : vector<16x1xf32>
    %235 = vector.broadcast %227 : vector<16x1xf32> to vector<16x32xf32>
    %236 = arith.subf %223, %235 : vector<16x32xf32>
    %cst_83 = arith.constant 9.99999996E-13 : f32
    %237 = vector.broadcast %cst_83 : f32 to vector<16x1xf32>
    %238 = arith.addf %234, %237 : vector<16x1xf32>
    %239 = math.rsqrt %238 : vector<16x1xf32>
    %240 = vector.broadcast %239 : vector<16x1xf32> to vector<16x32xf32>
    %241 = arith.mulf %236, %240 : vector<16x32xf32>
    %242 = vector.broadcast %5 : vector<1x32xf32> to vector<16x32xf32>
    %243 = arith.mulf %241, %242 : vector<16x32xf32>
    %244 = vector.broadcast %6 : vector<1x32xf32> to vector<16x32xf32>
    %245 = arith.addf %243, %244 : vector<16x32xf32>
    %c0_84 = arith.constant 0 : index
    %c0_85 = arith.constant 0 : index
    %246 = vector.load %arg10[%c0_84, %c0_85] : memref<16x32xf32, #tpu.memory_space<vmem>>, vector<16x32xf32>
    tpu.vector_store %arg10[%c0_84, %c0_85], %245 {strides = array<i32>} : memref<16x32xf32, #tpu.memory_space<vmem>>, vector<16x32xf32>,
    return
  }
  func.func @transform_0(%arg0: i32) -> (i32, i32) {
    %c0_i32 = arith.constant 0 : i32
    %c0_i32_0 = arith.constant 0 : i32
    %c0_i32_1 = arith.constant 0 : i32
    return %c0_i32, %c0_i32_0 : i32, i32
  }
  func.func @transform_1(%arg0: i32) -> (i32, i32) {
    %c0_i32 = arith.constant 0 : i32
    %c0_i32_0 = arith.constant 0 : i32
    %c0_i32_1 = arith.constant 0 : i32
    return %c0_i32, %c0_i32_0 : i32, i32
  }
  func.func @transform_2(%arg0: i32) -> (i32, i32) {
    %c0_i32 = arith.constant 0 : i32
    %c0_i32_0 = arith.constant 0 : i32
    %c0_i32_1 = arith.constant 0 : i32
    return %c0_i32, %c0_i32_0 : i32, i32
  }
  func.func @transform_3(%arg0: i32) -> (i32, i32) {
    %c0_i32 = arith.constant 0 : i32
    %c0_i32_0 = arith.constant 0 : i32
    %c0_i32_1 = arith.constant 0 : i32
    return %c0_i32, %c0_i32_0 : i32, i32
  }
  func.func @transform_4(%arg0: i32) -> (i32, i32) {
    %c0_i32 = arith.constant 0 : i32
    %c0_i32_0 = arith.constant 0 : i32
    %c0_i32_1 = arith.constant 0 : i32
    return %c0_i32, %c0_i32_0 : i32, i32
  }
  func.func @transform_5(%arg0: i32) -> (i32, i32) {
    %c0_i32 = arith.constant 0 : i32
    %c0_i32_0 = arith.constant 0 : i32
    %c0_i32_1 = arith.constant 0 : i32
    return %c0_i32, %c0_i32_0 : i32, i32
  }
  func.func @transform_6(%arg0: i32) -> (i32, i32, i32) {
    %c0_i32 = arith.constant 0 : i32
    %c0_i32_0 = arith.constant 0 : i32
    %c0_i32_1 = arith.constant 0 : i32
    %c0_i32_2 = arith.constant 0 : i32
    return %c0_i32, %c0_i32_0, %c0_i32_1 : i32, i32, i32
  }
  func.func @transform_7(%arg0: i32) -> (i32, i32) {
    %c0_i32 = arith.constant 0 : i32
    %c0_i32_0 = arith.constant 0 : i32
    %c0_i32_1 = arith.constant 0 : i32
    return %c0_i32, %c0_i32_0 : i32, i32
  }
  func.func @transform_8(%arg0: i32) -> (i32, i32) {
    %c0_i32 = arith.constant 0 : i32
    %c0_i32_0 = arith.constant 0 : i32
    %c0_i32_1 = arith.constant 0 : i32
    return %c0_i32, %c0_i32_0 : i32, i32
  }
  func.func @transform_9(%arg0: i32) -> (i32, i32) {
    %c0_i32 = arith.constant 0 : i32
    %c0_i32_0 = arith.constant 0 : i32
    %c0_i32_1 = arith.constant 0 : i32
    return %c0_i32, %c0_i32_0 : i32, i32
  }
}

</mosaic_0001>

<bundles_post_ra>
// kernel: tpu_custom_call.1
= control target key start
LH: loop header
LB: loop body
LE: loop exit
PB: predicated region body
PF: predicated region fallthrough
CT: control target
= control target key end

     0   :  { %14 = vsyncpa [#allocation3], 0  ;;  %s1716_s0 = inlined_call_operand.hbm [shape: f32[16,32], index: 0, kind: input, shape index: {}]   ;;  %s1717_s1 = inlined_call_operand.vmem [shape: f32[8,32], index: 1, kind: input, shape index: {}]   ;;  %s1718_s2 = inlined_call_operand.vmem [shape: f32[32,96], index: 2, kind: input, shape index: {}]   ;;  %s1719_s3 = inlined_call_operand.hbm [shape: f32[1,96], index: 3, kind: input, shape index: {}]   ;;  %s1720_s4 = inlined_call_operand.vmem [shape: f32[32,64], index: 4, kind: input, shape index: {}]   ;;  %s1721_s5 = inlined_call_operand.hbm [shape: f32[1,64], index: 5, kind: input, shape index: {}]   ;;  %s1722_s6 = inlined_call_operand.vmem [shape: f32[2,32,5], index: 6, kind: input, shape index: {}]   ;;  %s1723_s7 = inlined_call_operand.hbm [shape: f32[32,32], index: 7, kind: input, shape index: {}]   ;;  %s1724_s8 = inlined_call_operand.vmem [shape: f32[5,32], index: 8, kind: input, shape index: {}]   ;;  %s1725_s9 = inlined_call_operand.hbm [shape: f32[16,32], index: 9, kind: output, shape index: {}]  }
   0x1   :  { %15 = vsyncpa [#allocation6], 0 }
   0x2   :  { %16 = vsyncpa [#allocation9], 0  ;;  %s40_s11 = sshll.u32 %s1719_s3, 4  ;;  %s41_s11 = int_to_ptr.hbm [resolvable:$true] %s40_s11 }
   0x3   :  { %17 = vsyncpa [#allocation4], 0  ;;  %s1422_s12 = smov [#allocation5]   ;;  %s22_s16 = sshll.u32 %s1716_s0, 4  ;;  %s23_s16 = int_to_ptr.hbm [resolvable:$true] %s22_s16 }
   0x4   :  { %s42_s13 = sshll.u32 %s1422_s12, 4  ;;  %s1423_s17 = smov [#allocation2]   ;;  %s43_s13 = int_to_ptr.vmem [resolvable:$true] %s42_s13 }
   0x5   :  { %45 = dma.hbm_to_vmem [thread:$0]  %s41_s11, 16, %s43_s13, [#allocation6]  }
   0x6   :  { %s24_s18 = sshll.u32 %s1423_s17, 4  ;;  %s1424_s19 = smov 128   ;;  %s25_s18 = int_to_ptr.vmem [resolvable:$true] %s24_s18 }
   0x7   :  { %s1425_s20 = smov 8   ;;  %s53_s22 = sshll.u32 %s1721_s5, 4  ;;  %s54_s22 = int_to_ptr.hbm [resolvable:$true] %s53_s22 }
   0x8   :  { %30 = dma.hbm_to_vmem [thread:$0]  %s23_s16, 256, %s25_s18, [#allocation3], %s1424_s19, %s1424_s19, %s1425_s20  }
   0x9   :  { %s1426_s23 = smov [#allocation7]   ;;  %s65_s26 = sshll.u32 %s1723_s7, 4  ;;  %s66_s26 = int_to_ptr.hbm [resolvable:$true] %s65_s26 }
   0xa   :  { %s55_s24 = sshll.u32 %s1426_s23, 4  ;;  %s1427_s27 = smov [#allocation8]   ;;  %s56_s24 = int_to_ptr.vmem [resolvable:$true] %s55_s24 }
   0xb   :  { %58 = dma.hbm_to_vmem [thread:$0]  %s54_s22, 16, %s56_s24, [#allocation6]  }
   0xc   :  { %s67_s28 = sshll.u32 %s1427_s27, 4  ;;  %s68_s28 = int_to_ptr.vmem [resolvable:$true] %s67_s28 }
   0xd   :  { %73 = dma.hbm_to_vmem [thread:$0]  %s66_s26, 512, %s68_s28, [#allocation9], %s1424_s19, %s1424_s19, %s1425_s20  }
   0xe   :  { %1414 = dma.done.wait [#allocation3], 256  }
   0xf   :  { %1415 = vsyncadd [#allocation3], 4294967040 }
  0x10   :  { %1416 = dma.done.wait [#allocation6], 32  }
  0x11   :  { %1417 = vsyncadd [#allocation6], 4294967264 }
  0x12   :  { %1418 = dma.done.wait [#allocation9], 512  }
  0x13   :  { %1419 = vsyncadd [#allocation9], 4294966784  ;;  %v103_v0 = vld [vmem:[%s1718_s2 + $0x18] sm:$0xff]  ;;  %v102_v1 = vld [vmem:[%s1718_s2 + $0x10] sm:$0xff]  ;;  %vm108_vm0 = vcmask 261120   ;;  %s1428_s14 = smov 64  }
  0x14   :  { %127 = vmatpush.msra.mxu0 %v103_v0  ;;  %v101_v2 = vld [vmem:[%s1718_s2 + $0x8] sm:$0xff]  ;;  %v100_v3 = vld [vmem:[%s1718_s2] sm:$0xff]  ;;  %v1239_v5 = vld [vmem:[#allocation5] ss:$0 sm:$0xff]  ;;  %s1429_s15 = smov 96   ;;  %v1430_v16 = vmov 32.0  }
  0x15   :  { %v1516_v4 = vld [vmem:[#allocation2] sm:$0xff]  ;;  %v1526_v8 = vld [vmem:[#allocation2 + $0x8] sm:$0xff]  ;;  %v141_v11 = vld [vmem:[%s1722_s6 + $0x18] sm:$0xff]  ;;  %1246 = vrcp.f32 %v1430_v16  ;;  %vm374_vm2 = vcmask 39936   ;;  %vm306_vm6 = vcmask 64512   ;;  %s1432_s21 = smov 112  }
  0x16   :  { %128 = vmatpush.msra.mxu0 %v102_v1  ;;  %v94_v9 = vld [vmem:[%s1717_s1] sm:$0xff]  ;;  %v140_v12 = vld [vmem:[%s1722_s6 + $0x10] sm:$0xff]  ;;  %164 = vmatpush.msra.mxu1 %v141_v11  ;;  %v139_v13 = vld [vmem:[%s1722_s6 + $0x8] sm:$0xff]  ;;  %vm279_vm7 = vcmask 130048   ;;  %vm596_vm8 = vcmask 1044480   ;;  %s1434_s22 = smov 16  }
  0x17   :  { %v211_v10 = vsel %vm108_vm0, %v94_v9, 0.0  ;;  %1220 = vmatpush.msra.mxu2 %v141_v11  ;;  %v138_v14 = vld [vmem:[%s1722_s6] sm:$0xff]  ;;  %v1186_v43 = vld [vmem:[%s1722_s6 + $0x38] sm:$0xff]  ;;  %v1185_v45 = vld [vmem:[%s1722_s6 + $0x30] sm:$0xff]  ;;  %s1164_s29 = sshll.u32 %s1725_s9, 4  ;;  %s1165_s29 = int_to_ptr.hbm [resolvable:$true] %s1164_s29 }
  0x18   :  { %129 = vmatpush.msra.mxu0 %v101_v2  ;;  %165 = vmatpush.msra.mxu1 %v140_v12  ;;  %v1184_v47 = vld [vmem:[%s1722_s6 + $0x28] sm:$0xff]  ;;  %v247_v48 = vld [vmem:[%s1720_s4 + $0x18] sm:$0xff]  ;;  %v1183_v49 = vld [vmem:[%s1722_s6 + $0x20] sm:$0xff] }
  0x19   :  { %1221 = vmatpush.msra.mxu2 %v140_v12  ;;  %267 = vmatpush.msra.mxu3 %v247_v48  ;;  %v246_v50 = vld [vmem:[%s1720_s4 + $0x10] sm:$0xff]  ;;  %v245_v53 = vld [vmem:[%s1720_s4 + $0x8] sm:$0xff]  ;;  %v244_v54 = vld [vmem:[%s1720_s4] sm:$0xff] }
  0x1a   :  { %130 = vmatpush.msra.mxu0 %v100_v3  ;;  %166 = vmatpush.msra.mxu1 %v139_v13  ;;  %v1240_v3 = vld [vmem:[%s1724_s8 + $0x1] ss:$0 sm:$0xff]  ;;  %v1242_v16 = vld [vmem:[#allocation7] ss:$0 sm:$0xff] }
  0x1b   :  { %1179 = vmatmul.msk.f32.vlgmr.msra.gmra.mxu0 %vm108_vm0, %v1516_v4  ;;  %1222 = vmatpush.msra.mxu2 %v139_v13  ;;  %v1247_v17 = vpop.eup %1246 }
  0x1c   :  { %167 = vmatpush.msra.mxu1 %v138_v14  ;;  %v215_v18 = vmul.f32 32.0, %v1247_v17  ;;  %vm219_vm1 = vweird.f32 %v1247_v17  ;;  %268 = vmatpush.msra.mxu3 %v246_v50 }
  0x1d   :  { %1223 = vmatpush.msra.mxu2 %v138_v14 }
  0x1e   :  { %v216_v19 = vsub.f32 1.0, %v215_v18  ;;  %269 = vmatpush.msra.mxu3 %v245_v53 }
  0x1f   :  { %200 = vmatpush.msrb.mxu2 %v1186_v43 }
  0x20   :  { %v217_v20 = vmul.f32 %v1247_v17, %v216_v19  ;;  %270 = vmatpush.msra.mxu3 %v244_v54 }
  0x21   :  { %201 = vmatpush.msrb.mxu2 %v1185_v45 }
  0x22   :  { %v218_v21 = vadd.f32 %v1247_v17, %v217_v20 }
  0x23   :  { %1180 = vmatmul.msk.f32.gmra.mxu0 %vm108_vm0, %v1526_v8  ;;  %202 = vmatpush.msrb.mxu2 %v1184_v47 }
  0x24   :  { %v1547_v22 = vsel %vm219_vm1, %v1247_v17, %v218_v21 }
  0x25   :  { %203 = vmatpush.msrb.mxu2 %v1183_v49 }
  0x98   :  { %v132_v6 = vpop.f32.mrf.mxu0 }
  0x99   :  { %v1520_v7 = vadd.f32 %v1239_v5, %v132_v6 }
  0x9b   :  { %180 = vrot.lane.b32.xlu2 %v1520_v7, %s1428_s14  ;;  %144 = vrot.lane.b32.xlu0 %v1520_v7, %s1429_s15 }
  0xa0   :  { %v135_v28 = vpop.f32.mrf.mxu0 }
  0xa1   :  { %v1555_v29 = vadd.f32 %v1239_v5, %v135_v28 }
  0xc5   :  { %212 = vadd.xlane.f32.xlu0 %v211_v10 }
  0xf5   :  { %v1595_v11 = vpop.permute.xlu2 %180 }
 0x10d   :  { %v145_v15 = vpop.permute.xlu0 %144 }
 0x10e   :  { %1181 = vmatmul.msk.f32.vlgmr.msra.gmra.mxu1 %vm108_vm0, %v145_v15 }
 0x10f   :  { %464 = vmatpush.msrb.mxu1 %v145_v15 }
 0x138   :  { %v213_v23 = vpop.xlane.xlu0 %212 }
 0x139   :  { %v221_v24 = vmul.f32 %v1547_v22, %v213_v23 }
 0x13b   :  { %v1550_v25 = vsub.f32 %v94_v9, %v221_v24  ;;  %v1241_v9 = vld [vmem:[%s1724_s8 + $0x2] ss:$0 sm:$0xff] }
 0x13d   :  { %v223_v26 = vmul.f32 %v1550_v25, %v1550_v25 }
 0x13f   :  { %v224_v27 = vsel %vm108_vm0, %v223_v26, 0.0 }
 0x140   :  { %225 = vadd.xlane.f32.xlu1 %v224_v27 }
 0x159   :  { %146 = vrot.lane.b32.xlu1 %v1555_v29, %s1429_s15 }
 0x18b   :  { %v169_v30 = vpop.f32.mrf.mxu1 }
 0x18c   :  { %v375_v31 = vsel %vm374_vm2, %v169_v30, -inf }
 0x18d   :  { %v376_v32 = vrot.slane %v375_v31, 4 }
 0x18f   :  { %v377_v33 = vmax.f32 %v375_v31, %v376_v32 }
 0x191   :  { %v378_v34 = vrot.slane %v377_v33, 2 }
 0x193   :  { %v379_v35 = vmax.f32 %v377_v33, %v378_v34 }
 0x195   :  { %v380_v36 = vrot.slane %v379_v35, 1 }
 0x197   :  { %v381_v37 = vmax.f32 %v379_v35, %v380_v36 }
 0x199   :  { %v382_v38 = vsub.f32 %v169_v30, %v381_v37 }
 0x19b   :  { %v383_v39 = vmul.f32 1.442695, %v382_v38 }
 0x19d   :  { %1248 = vpow2.f32 %v383_v39 }
 0x1a3   :  { %v1249_v40 = vpop.eup %1248 }
 0x1a4   :  { %v385_v41 = vsel %vm374_vm2, %v1249_v40, 0.0 }
 0x1a5   :  { %v386_v42 = vrot.slane %v385_v41, 4 }
 0x1a7   :  { %v387_v44 = vadd.f32 %v386_v42, %v385_v41 }
 0x1a9   :  { %v388_v46 = vrot.slane %v387_v44, 2 }
 0x1ab   :  { %v389_v51 = vadd.f32 %v388_v46, %v387_v44 }
 0x1ad   :  { %v390_v52 = vrot.slane %v389_v51, 1 }
 0x1af   :  { %v391_v55 = vadd.f32 %v390_v52, %v389_v51 }
 0x1b1   :  { %1250 = vrcp.f32 %v391_v55 }
 0x1b3   :  { %v226_v56 = vpop.xlane.xlu1 %225 }
 0x1b4   :  { %v227_v57 = vmul.f32 %v226_v56, %v1547_v22 }
 0x1b6   :  { %v228_v58 = vadd.f32 1e-12, %v227_v57 }
 0x1b7   :  { %v1251_v59 = vpop.eup %1250 }
 0x1b8   :  { %1252 = vrsqrt.f32 %v228_v58  ;;  %v393_v60 = vmul.f32 %v1251_v59, %v1249_v40  ;;  %vm235_vm4 = vweird.f32 %v228_v58 }
 0x1ba   :  { %413 = vxpose.xlu2.b32.start.end [1/1] (short) (narrow) %v393_v60, 8 }
 0x1be   :  { %v1253_v61 = vpop.eup %1252 }
 0x1bf   :  { %v230_v62 = vmul.f32 %v1253_v61, %v228_v58  ;;  %vm236_vm3 = vweird.f32 %v1253_v61 }
 0x1c0   :  { %vm237_vm5 = vmor %vm235_vm4, %vm236_vm3 }
 0x1c1   :  { %v231_v63 = vmul.f32 %v1253_v61, %v230_v62 }
 0x1c3   :  { %v232_v0 = vmul.f32 0.5, %v231_v63 }
 0x1c5   :  { %v233_v1 = vsub.f32 1.5, %v232_v0 }
 0x1c7   :  { %v234_v2 = vmul.f32 %v1253_v61, %v233_v1 }
 0x1c9   :  { %v238_v5 = vsel %vm237_vm5, %v1253_v61, %v234_v2 }
 0x1ca   :  { %v239_v6 = vmul.f32 %v238_v5, %v1550_v25 }
 0x1cb   :  { %v1593_v10 = vpop.permute.xlu1 %146 }
 0x1cc   :  { %1182 = vmatmul.msk.f32.vlgmr.msra.gmra.mxu2 %vm108_vm0, %v1593_v10  ;;  %v241_v12 = vmul.f32 %v1240_v3, %v239_v6 }
 0x1cd   :  { %520 = vmatpush.msra.mxu2 %v1595_v11 }
 0x1ce   :  { %v243_v13 = vadd.f32 %v1241_v9, %v241_v12 }
 0x1d0   :  { %1189 = vmatmul.msk.f32.vlgmr.msra.gmra.mxu3 %vm108_vm0, %v243_v13 }
 0x1d4   :  { %1187 = vmatmul.msk.f32.vlgmr.msrb.gmra.mxu2 %vm108_vm0, %v1595_v11 }
 0x24f   :  { %v172_v14 = vpop.f32.mrf.mxu2 }
 0x250   :  { %v726_v15 = vsel %vm374_vm2, %v172_v14, -inf }
 0x251   :  { %v727_v17 = vrot.slane %v726_v15, 4 }
 0x253   :  { %v728_v18 = vmax.f32 %v726_v15, %v727_v17  ;;  %v429_v19 = vpop.trf.xlu2  ;;  %v272_v20 = vpop.f32.mrf.mxu3 }
 0x254   :  { %v273_v21 = vadd.f32 %v1242_v16, %v272_v20  ;;  %1194 = vmatmul.msk.f32.vlgmr.msrb.gmra.mxu1 %vm306_vm6, %v429_v19 }
 0x255   :  { %v729_v23 = vrot.slane %v728_v18, 2 }
 0x256   :  { %277 = vrot.lane.b32.xlu1 %v273_v21, %s1429_s15  ;;  %s1431_s15 = smov 80   ;;  %v275_v61 = vmul.f32 0.17677669, %v273_v21 }
 0x257   :  { %v730_v24 = vmax.f32 %v728_v18, %v729_v23  ;;  %v205_v25 = vpop.f32.mrf.mxu2 }
 0x258   :  { %v394_v26 = vsel %vm374_vm2, %v205_v25, -inf }
 0x259   :  { %v731_v27 = vrot.slane %v730_v24, 1  ;;  %v395_v28 = vrot.slane %v394_v26, 4 }
 0x25b   :  { %v732_v30 = vmax.f32 %v730_v24, %v731_v27  ;;  %v396_v31 = vmax.f32 %v394_v26, %v395_v28 }
 0x25d   :  { %v733_v32 = vsub.f32 %v172_v14, %v732_v30  ;;  %v397_v33 = vrot.slane %v396_v31, 2 }
 0x25e   :  { %182 = vrot.lane.b32.xlu1 %v1555_v29, %s1428_s14  ;;  %s1433_s14 = smov 48  }
 0x25f   :  { %v734_v34 = vmul.f32 1.442695, %v733_v32  ;;  %v398_v35 = vmax.f32 %v396_v31, %v397_v33 }
 0x261   :  { %1254 = vpow2.f32 %v734_v34  ;;  %v399_v36 = vrot.slane %v398_v35, 1 }
 0x263   :  { %v400_v37 = vmax.f32 %v398_v35, %v399_v36 }
 0x265   :  { %v401_v38 = vsub.f32 %v205_v25, %v400_v37 }
 0x266   :  { %328 = vrot.lane.b32.xlu1 %v273_v21, %s1431_s15 }
 0x267   :  { %v1255_v39 = vpop.eup %1254  ;;  %v402_v40 = vmul.f32 1.442695, %v401_v38 }
 0x268   :  { %v736_v41 = vsel %vm374_vm2, %v1255_v39, 0.0 }
 0x269   :  { %v737_v42 = vrot.slane %v736_v41, 4  ;;  %1256 = vpow2.f32 %v402_v40 }
 0x26b   :  { %v738_v43 = vadd.f32 %v737_v42, %v736_v41 }
 0x26d   :  { %v739_v44 = vrot.slane %v738_v43, 2 }
 0x26e   :  { %620 = vrot.lane.b32.xlu1 %v1520_v7, %s1432_s21 }
 0x26f   :  { %v1257_v45 = vpop.eup %1256  ;;  %v740_v46 = vadd.f32 %v739_v44, %v738_v43 }
 0x270   :  { %v404_v47 = vsel %vm374_vm2, %v1257_v45, 0.0 }
 0x271   :  { %v405_v48 = vrot.slane %v404_v47, 4  ;;  %v741_v49 = vrot.slane %v740_v46, 1 }
 0x273   :  { %v406_v50 = vadd.f32 %v405_v48, %v404_v47  ;;  %v742_v51 = vadd.f32 %v741_v49, %v740_v46 }
 0x275   :  { %v407_v52 = vrot.slane %v406_v50, 2  ;;  %1258 = vrcp.f32 %v742_v51 }
 0x276   :  { %967 = vrot.lane.b32.xlu1 %v1555_v29, %s1432_s21 }
 0x277   :  { %v408_v53 = vadd.f32 %v407_v52, %v406_v50 }
 0x279   :  { %v409_v54 = vrot.slane %v408_v53, 1 }
 0x27b   :  { %v1259_v55 = vpop.eup %1258  ;;  %v410_v56 = vadd.f32 %v409_v54, %v408_v53 }
 0x27c   :  { %v744_v57 = vmul.f32 %v1259_v55, %v1255_v39 }
 0x27d   :  { %1260 = vrcp.f32 %v410_v56 }
 0x27e   :  { %764 = vxpose.xlu0.b32.start.end [1/1] (short) (narrow) %v744_v57, 8 }
 0x283   :  { %v1261_v58 = vpop.eup %1260 }
 0x284   :  { %v412_v59 = vmul.f32 %v1261_v58, %v1257_v45 }
 0x286   :  { %469 = vxpose.xlu2.b32.start.end [1/1] (short) (narrow) %v412_v59, 8 }
 0x2c8   :  { %v278_v60 = vpop.permute.xlu1 %277 }
 0x2c9   :  { %1190 = vmatpush.xpose.msk.msrb.mxu3 %vm279_vm7, %v278_v60 }
 0x2cc   :  { %1191 = vmatmul.msk.f32.vlgmr.msrb.gmra.mxu3 %vm279_vm7, %v275_v61 }
 0x2d0   :  { %v1617_v62 = vpop.permute.xlu1 %182 }
 0x2d1   :  { %1188 = vmatmul.msk.f32.gmra.mxu2 %vm108_vm0, %v1617_v62  ;;  %v466_v63 = vpop.f32.mrf.mxu1 }
 0x2d2   :  { %622 = vrot.lane.b32.xlu1 %v466_v63, %s1432_s21  ;;  %1196 = vmatpush.xpose.msk.msra.mxu3 %vm279_vm7, %v466_v63 }
 0x2d5   :  { %1197 = vmatmul.msk.f32.vlgmr.msra.gmra.mxu3 %vm279_vm7, %v1520_v7 }
 0x2d8   :  { %v329_v0 = vpop.permute.xlu1 %328 }
 0x2d9   :  { %1192 = vmatpush.xpose.msk.msrb.mxu0 %vm279_vm7, %v329_v0 }
 0x2dd   :  { %588 = vmatpush.msra.mxu0 %v1595_v11 }
 0x2e0   :  { %v621_v2 = vpop.permute.xlu1 %620 }
 0x2e8   :  { %v1631_v3 = vpop.permute.xlu1 %967 }
 0x2ec   :  { %668 = vrot.lane.b32.xlu0 %v1520_v7, %s1433_s14 }
 0x2ef   :  { %326 = vrot.lane.b32.xlu2 %v275_v61, %s1432_s21 }
 0x2f7   :  { %1015 = vrot.lane.b32.xlu2 %v1555_v29, %s1433_s14 }
 0x31f   :  { %v485_v1 = vpop.trf.xlu2 }
 0x320   :  { %1195 = vmatmul.msk.f32.vlgmr.msra.gmra.mxu2 %vm306_vm6, %v485_v1 }
 0x322   :  { %v780_v13 = vpop.trf.xlu0 }
 0x344   :  { %v623_v5 = vpop.permute.xlu1 %622 }
 0x345   :  { %1201 = vmatpush.xpose.msk.msrb.mxu2 %vm279_vm7, %v623_v5 }
 0x348   :  { %1202 = vmatmul.msk.f32.vlgmr.msrb.gmra.mxu2 %vm279_vm7, %v621_v2 }
 0x349   :  { %871 = vmatpush.msra.mxu2 %v1617_v62  ;;  %v327_v6 = vpop.permute.xlu2 %326 }
 0x34a   :  { %1193 = vmatmul.msk.f32.vlgmr.msrb.gmra.mxu0 %vm279_vm7, %v327_v6 }
 0x34f   :  { %v302_v7 = vpop.f32.mrf.mxu3 }
 0x350   :  { %v305_v9 = vmul.f32 0.25, %v302_v7 }
 0x352   :  { %v307_v11 = vsel %vm306_vm6, %v305_v9, -inf }
 0x353   :  { %v308_v12 = vrot.slane %v307_v11, 4 }
 0x354   :  { %v208_v53 = vpop.f32.mrf.mxu2 }
 0x355   :  { %v309_v14 = vmax.f32 %v307_v11, %v308_v12 }
 0x357   :  { %v310_v15 = vrot.slane %v309_v14, 2 }
 0x358   :  { %v547_v16 = vpop.f32.mrf.mxu3 }
 0x359   :  { %v311_v17 = vmax.f32 %v309_v14, %v310_v15  ;;  %v550_v18 = vmul.f32 0.25, %v547_v16 }
 0x35b   :  { %v312_v19 = vrot.slane %v311_v17, 1  ;;  %v551_v20 = vsel %vm374_vm2, %v550_v18, -inf }
 0x35c   :  { %v552_v21 = vrot.slane %v551_v20, 4 }
 0x35d   :  { %v313_v23 = vmax.f32 %v311_v17, %v312_v19 }
 0x35e   :  { %v553_v24 = vmax.f32 %v551_v20, %v552_v21  ;;  %v669_v25 = vpop.permute.xlu0 %668 }
 0x35f   :  { %v314_v26 = vsub.f32 %v305_v9, %v313_v23  ;;  %689 = vmatpush.msrb.mxu3 %v669_v25 }
 0x360   :  { %v554_v27 = vrot.slane %v553_v24, 2 }
 0x361   :  { %v315_v28 = vmul.f32 1.442695, %v314_v26 }
 0x362   :  { %v555_v30 = vmax.f32 %v553_v24, %v554_v27 }
 0x363   :  { %1262 = vpow2.f32 %v315_v28 }
 0x364   :  { %v556_v31 = vrot.slane %v555_v30, 1 }
 0x366   :  { %v557_v34 = vmax.f32 %v555_v30, %v556_v31  ;;  %v1016_v30 = vpop.permute.xlu2 %1015 }
 0x368   :  { %v558_v37 = vsub.f32 %v550_v18, %v557_v34  ;;  %v745_v18 = vsel %vm374_vm2, %v208_v53, -inf }
 0x369   :  { %v1263_v32 = vpop.eup %1262  ;;  %v746_v19 = vrot.slane %v745_v18, 4 }
 0x36a   :  { %v317_v33 = vsel %vm306_vm6, %v1263_v32, 0.0  ;;  %v559_v40 = vmul.f32 1.442695, %v558_v37 }
 0x36b   :  { %v318_v35 = vrot.slane %v317_v33, 4  ;;  %v747_v20 = vmax.f32 %v745_v18, %v746_v19 }
 0x36c   :  { %1264 = vpow2.f32 %v559_v40 }
 0x36d   :  { %v319_v36 = vadd.f32 %v318_v35, %v317_v33  ;;  %v748_v21 = vrot.slane %v747_v20, 2 }
 0x36f   :  { %v320_v38 = vrot.slane %v319_v36, 2  ;;  %v749_v23 = vmax.f32 %v747_v20, %v748_v21 }
 0x371   :  { %v321_v39 = vadd.f32 %v320_v38, %v319_v36  ;;  %v750_v24 = vrot.slane %v749_v23, 1 }
 0x372   :  { %v1265_v43 = vpop.eup %1264 }
 0x373   :  { %v322_v41 = vrot.slane %v321_v39, 1  ;;  %v561_v46 = vsel %vm374_vm2, %v1265_v43, 0.0  ;;  %v751_v26 = vmax.f32 %v749_v23, %v750_v24 }
 0x374   :  { %v562_v47 = vrot.slane %v561_v46, 4 }
 0x375   :  { %v323_v42 = vadd.f32 %v322_v41, %v321_v39  ;;  %v752_v27 = vsub.f32 %v208_v53, %v751_v26 }
 0x376   :  { %v563_v48 = vadd.f32 %v562_v47, %v561_v46 }
 0x377   :  { %1266 = vrcp.f32 %v323_v42  ;;  %v753_v31 = vmul.f32 1.442695, %v752_v27 }
 0x378   :  { %v564_v49 = vrot.slane %v563_v48, 2 }
 0x37a   :  { %v565_v50 = vadd.f32 %v564_v49, %v563_v48 }
 0x37c   :  { %v566_v51 = vrot.slane %v565_v50, 1 }
 0x37d   :  { %v1267_v44 = vpop.eup %1266 }
 0x37e   :  { %v1640_v45 = vmul.f32 %v1267_v44, %v1263_v32  ;;  %v567_v52 = vadd.f32 %v566_v51, %v565_v50 }
 0x380   :  { %1198 = vmatmul.msk.f32.vlgmr.msra.gmra.mxu0 %vm306_vm6, %v1640_v45  ;;  %1268 = vrcp.f32 %v567_v52 }
 0x386   :  { %v1269_v54 = vpop.eup %1268 }
 0x387   :  { %v569_v55 = vmul.f32 %v1269_v54, %v1265_v43 }
 0x3a3   :  { %v522_v56 = vpop.f32.mrf.mxu2 }
 0x3a4   :  { %1199 = vmatpush.msk.msra.mxu1 %vm596_vm8, %v522_v56 }
 0x3a5   :  { %1200 = vmatmul.msk.f32.vlgmr.msra.gmra.mxu1 %vm374_vm2, %v569_v55 }
 0x3a6   :  { %815 = vmatpush.msrb.mxu1 %v1593_v10 }
 0x3ad   :  { %1206 = vmatmul.msk.f32.vlgmr.msrb.gmra.mxu1 %vm306_vm6, %v780_v13 }
 0x3c7   :  { %v351_v57 = vpop.f32.mrf.mxu0 }
 0x3c8   :  { %v354_v58 = vmul.f32 0.25, %v351_v57 }
 0x3ca   :  { %v355_v59 = vsel %vm306_vm6, %v354_v58, -inf }
 0x3cb   :  { %v356_v60 = vrot.slane %v355_v59, 4 }
 0x3cd   :  { %v357_v61 = vmax.f32 %v355_v59, %v356_v60 }
 0x3cf   :  { %v358_v63 = vrot.slane %v357_v61, 2 }
 0x3d1   :  { %v359_v0 = vmax.f32 %v357_v61, %v358_v63 }
 0x3d3   :  { %v360_v1 = vrot.slane %v359_v0, 1 }
 0x3d5   :  { %v361_v2 = vmax.f32 %v359_v0, %v360_v1 }
 0x3d7   :  { %v362_v5 = vsub.f32 %v354_v58, %v361_v2 }
 0x3d9   :  { %v363_v6 = vmul.f32 1.442695, %v362_v5 }
 0x3db   :  { %1270 = vpow2.f32 %v363_v6 }
 0x3e1   :  { %v1271_v7 = vpop.eup %1270 }
 0x3e2   :  { %v365_v9 = vsel %vm306_vm6, %v1271_v7, 0.0 }
 0x3e3   :  { %v366_v11 = vrot.slane %v365_v9, 4 }
 0x3e5   :  { %v367_v10 = vadd.f32 %v366_v11, %v365_v9 }
 0x3e7   :  { %v368_v12 = vrot.slane %v367_v10, 2 }
 0x3e9   :  { %v369_v13 = vadd.f32 %v368_v12, %v367_v10 }
 0x3eb   :  { %v370_v14 = vrot.slane %v369_v13, 1 }
 0x3ed   :  { %v371_v15 = vadd.f32 %v370_v14, %v369_v13 }
 0x3ef   :  { %1272 = vrcp.f32 %v371_v15 }
 0x3f0   :  { %1274 = vpow2.f32 %v753_v31 }
 0x3f5   :  { %v1273_v16 = vpop.eup %1272 }
 0x3f6   :  { %v373_v17 = vmul.f32 %v1273_v16, %v1271_v7  ;;  %v1275_v32 = vpop.eup %1274 }
 0x3f7   :  { %v755_v33 = vsel %vm374_vm2, %v1275_v32, 0.0 }
 0x3f8   :  { %1203 = vmatmul.msk.f32.vlgmr.msrb.gmra.mxu3 %vm306_vm6, %v373_v17  ;;  %v756_v34 = vrot.slane %v755_v33, 4 }
 0x3fa   :  { %v757_v35 = vadd.f32 %v756_v34, %v755_v33 }
 0x3fc   :  { %v758_v36 = vrot.slane %v757_v35, 2 }
 0x3fe   :  { %v759_v37 = vadd.f32 %v758_v36, %v757_v35  ;;  %v590_v36 = vpop.f32.mrf.mxu0 }
 0x400   :  { %v760_v38 = vrot.slane %v759_v37, 1 }
 0x402   :  { %v761_v39 = vadd.f32 %v760_v38, %v759_v37 }
 0x404   :  { %1276 = vrcp.f32 %v761_v39 }
 0x40a   :  { %v1277_v40 = vpop.eup %1276 }
 0x40b   :  { %v763_v41 = vmul.f32 %v1277_v40, %v1275_v32 }
 0x422   :  { %v1653_v25 = vpop.f32.mrf.mxu1 }
 0x42a   :  { %v817_v28 = vpop.f32.mrf.mxu1 }
 0x42b   :  { %969 = vrot.lane.b32.xlu1 %v817_v28, %s1432_s21  ;;  %1208 = vmatpush.xpose.msk.msra.mxu3 %vm279_vm7, %v817_v28 }
 0x42e   :  { %1209 = vmatmul.msk.f32.vlgmr.msra.gmra.mxu3 %vm279_vm7, %v1555_v29  ;;  %v645_v29 = vpop.f32.mrf.mxu2 }
 0x42f   :  { %1033 = vmatpush.msrb.mxu3 %v1016_v30  ;;  %v648_v43 = vmul.f32 0.25, %v645_v29 }
 0x431   :  { %v649_v44 = vsel %vm374_vm2, %v648_v43, -inf }
 0x432   :  { %v650_v46 = vrot.slane %v649_v44, 4 }
 0x434   :  { %v651_v47 = vmax.f32 %v649_v44, %v650_v46  ;;  %v1073_v46 = vld [vmem:[#allocation8 + $0x18] sm:$0xff] }
 0x436   :  { %1215 = vmatmul.msk.f32.vlgmr.msrb.gmra.mxu3 %vm306_vm6, %v373_v17  ;;  %v652_v48 = vrot.slane %v651_v47, 2 }
 0x438   :  { %v653_v49 = vmax.f32 %v651_v47, %v652_v48  ;;  %v1072_v47 = vld [vmem:[#allocation8 + $0x10] sm:$0xff] }
 0x43a   :  { %v654_v50 = vrot.slane %v653_v49, 1 }
 0x43c   :  { %v655_v51 = vmax.f32 %v653_v49, %v654_v50 }
 0x43e   :  { %v656_v52 = vsub.f32 %v648_v43, %v655_v51 }
 0x440   :  { %v657_v53 = vmul.f32 1.442695, %v656_v52 }
 0x442   :  { %1278 = vpow2.f32 %v657_v53 }
 0x448   :  { %v1279_v55 = vpop.eup %1278 }
 0x449   :  { %v659_v57 = vsel %vm374_vm2, %v1279_v55, 0.0 }
 0x460   :  { %820 = vxpose.xlu1.b32.start.end [1/1] (short) (narrow) %v763_v41, 8 }
 0x47b   :  { %v691_v1 = vpop.f32.mrf.mxu3 }
 0x49d   :  { %v970_v42 = vpop.permute.xlu1 %969 }
 0x49e   :  { %1213 = vmatpush.xpose.msk.msrb.mxu2 %vm279_vm7, %v970_v42 }
 0x4b1   :  { %v898_v6 = vpop.f32.mrf.mxu3 }
 0x4b2   :  { %v901_v7 = vmul.f32 0.25, %v898_v6 }
 0x4ba   :  { %694 = vrot.lane.b32.xlu1 %v522_v56, %s1432_s21  ;;  %v660_v56 = vrot.slane %v659_v57, 4 }
 0x4bc   :  { %v661_v58 = vadd.f32 %v660_v56, %v659_v57  ;;  %v1071_v57 = vld [vmem:[#allocation8 + $0x8] sm:$0xff]  ;;  %v1070_v56 = vld [vmem:[#allocation8] sm:$0xff] }
 0x4be   :  { %v662_v59 = vrot.slane %v661_v58, 2 }
 0x4c0   :  { %v663_v60 = vadd.f32 %v662_v59, %v661_v58  ;;  %v618_v58 = vadd.f32 %v1653_v25, %v590_v36 }
 0x4c2   :  { %v664_v61 = vrot.slane %v663_v60, 1 }
 0x4c4   :  { %v665_v63 = vadd.f32 %v664_v61, %v663_v60 }
 0x4c6   :  { %1280 = vrcp.f32 %v665_v63  ;;  %v1035_v63 = vpop.f32.mrf.mxu3 }
 0x4cc   :  { %v1281_v0 = vpop.eup %1280 }
 0x4cd   :  { %v667_v2 = vmul.f32 %v1281_v0, %v1279_v55 }
 0x504   :  { %v836_v54 = vpop.trf.xlu1 }
 0x505   :  { %1207 = vmatmul.msk.f32.vlgmr.msra.gmra.mxu2 %vm306_vm6, %v836_v54 }
 0x50d   :  { %1214 = vmatmul.msk.f32.vlgmr.msrb.gmra.mxu2 %vm279_vm7, %v1631_v3  ;;  %v902_v3 = vsel %vm374_vm2, %v901_v7, -inf }
 0x50e   :  { %v903_v9 = vrot.slane %v902_v3, 4 }
 0x510   :  { %v904_v11 = vmax.f32 %v902_v3, %v903_v9 }
 0x512   :  { %v905_v10 = vrot.slane %v904_v11, 2 }
 0x514   :  { %v906_v12 = vmax.f32 %v904_v11, %v905_v10 }
 0x516   :  { %v907_v13 = vrot.slane %v906_v12, 1 }
 0x518   :  { %v908_v14 = vmax.f32 %v906_v12, %v907_v13 }
 0x51a   :  { %v909_v15 = vsub.f32 %v901_v7, %v908_v14 }
 0x51c   :  { %v910_v16 = vmul.f32 1.442695, %v909_v15 }
 0x51e   :  { %1282 = vpow2.f32 %v910_v16 }
 0x524   :  { %v1283_v17 = vpop.eup %1282 }
 0x525   :  { %v912_v18 = vsel %vm374_vm2, %v1283_v17, 0.0 }
 0x52c   :  { %v695_v5 = vpop.permute.xlu1 %694 }
 0x52d   :  { %1204 = vmatpush.msk.msrb.mxu0 %vm596_vm8, %v695_v5  ;;  %v1243_v5 = vld [vmem:[%s1724_s8] ss:$0 sm:$0xff] }
 0x52e   :  { %1205 = vmatmul.msk.f32.vlgmr.msrb.gmra.mxu0 %vm374_vm2, %v667_v2 }
 0x52f   :  { %936 = vmatpush.msra.mxu0 %v1617_v62  ;;  %v913_v62 = vrot.slane %v912_v18, 4 }
 0x531   :  { %v914_v19 = vadd.f32 %v913_v62, %v912_v18 }
 0x533   :  { %v915_v20 = vrot.slane %v914_v19, 2 }
 0x535   :  { %v916_v21 = vadd.f32 %v915_v20, %v914_v19 }
 0x536   :  { %1210 = vmatmul.msk.f32.vlgmr.msra.gmra.mxu0 %vm306_vm6, %v1640_v45 }
 0x537   :  { %v917_v23 = vrot.slane %v916_v21, 1 }
 0x539   :  { %v918_v45 = vadd.f32 %v917_v23, %v916_v21 }
 0x53b   :  { %1284 = vrcp.f32 %v918_v45 }
 0x541   :  { %v1285_v24 = vpop.eup %1284 }
 0x542   :  { %v920_v26 = vmul.f32 %v1285_v24, %v1283_v17 }
 0x588   :  { %v873_v27 = vpop.f32.mrf.mxu2 }
 0x589   :  { %1038 = vrot.lane.b32.xlu2 %v873_v27, %s1432_s21  ;;  %1211 = vmatpush.msk.msra.mxu1 %vm596_vm8, %v873_v27 }
 0x58a   :  { %1212 = vmatmul.msk.f32.vlgmr.msra.gmra.mxu1 %vm374_vm2, %v920_v26 }
 0x58b   :  { %1093 = vmatpush.msrb.mxu1 %v1073_v46 }
 0x58d   :  { %1094 = vmatpush.msrb.mxu1 %v1072_v47 }
 0x58f   :  { %1095 = vmatpush.msrb.mxu1 %v1071_v57 }
 0x590   :  { %v992_v28 = vpop.f32.mrf.mxu2 }
 0x591   :  { %v995_v30 = vmul.f32 0.25, %v992_v28  ;;  %1096 = vmatpush.msrb.mxu1 %v1070_v56 }
 0x593   :  { %v996_v31 = vsel %vm374_vm2, %v995_v30, -inf }
 0x594   :  { %v997_v32 = vrot.slane %v996_v31, 4 }
 0x596   :  { %v998_v33 = vmax.f32 %v996_v31, %v997_v32  ;;  %v1245_v32 = vld [vmem:[%s1724_s8 + $0x4] ss:$0 sm:$0xff] }
 0x598   :  { %v999_v34 = vrot.slane %v998_v33, 2 }
 0x59a   :  { %v1000_v35 = vmax.f32 %v998_v33, %v999_v34 }
 0x59c   :  { %v1001_v37 = vrot.slane %v1000_v35, 1 }
 0x59e   :  { %v1002_v38 = vmax.f32 %v1000_v35, %v1001_v37 }
 0x5a0   :  { %v1003_v41 = vsub.f32 %v995_v30, %v1002_v38 }
 0x5a2   :  { %v1004_v42 = vmul.f32 1.442695, %v1003_v41 }
 0x5a4   :  { %1286 = vpow2.f32 %v1004_v42 }
 0x5aa   :  { %v1287_v29 = vpop.eup %1286 }
 0x5ab   :  { %v718_v39 = vpop.f32.mrf.mxu0  ;;  %v1006_v43 = vsel %vm374_vm2, %v1287_v29, 0.0 }
 0x5ac   :  { %v719_v40 = vadd.f32 %v718_v39, %v691_v1  ;;  %v1007_v44 = vrot.slane %v1006_v43, 4 }
 0x5ae   :  { %722 = vrot.lane.b32.xlu2 %v719_v40, %s1434_s22  ;;  %v1008_v48 = vadd.f32 %v1007_v44, %v1006_v43 }
 0x5b0   :  { %v1009_v49 = vrot.slane %v1008_v48, 2 }
 0x5b2   :  { %v1010_v50 = vadd.f32 %v1009_v49, %v1008_v48 }
 0x5b3   :  { %v938_v61 = vpop.f32.mrf.mxu0 }
 0x5b4   :  { %v1011_v51 = vrot.slane %v1010_v50, 1 }
 0x5b6   :  { %v1012_v52 = vadd.f32 %v1011_v51, %v1010_v50 }
 0x5b8   :  { %1288 = vrcp.f32 %v1012_v52 }
 0x5be   :  { %v1289_v53 = vpop.eup %1288 }
 0x5bf   :  { %v1014_v54 = vmul.f32 %v1289_v53, %v1287_v29 }
 0x5e3   :  { %v1039_v55 = vpop.permute.xlu2 %1038 }
 0x5e4   :  { %1216 = vmatpush.msk.msrb.mxu0 %vm596_vm8, %v1039_v55 }
 0x5e5   :  { %1217 = vmatmul.msk.f32.vlgmr.msrb.gmra.mxu0 %vm374_vm2, %v1014_v54 }
 0x607   :  { %v964_v2 = vpop.f32.mrf.mxu1 }
 0x608   :  { %v723_v59 = vpop.permute.xlu2 %722  ;;  %v965_v9 = vadd.f32 %v964_v2, %v938_v61 }
 0x609   :  { %v725_v60 = vsel %vm279_vm7, %v618_v58, %v723_v59 }
 0x60a   :  { %1218 = vmatmul.msk.f32.vlgmr.msrb.gmra.mxu1 %vm108_vm0, %v725_v60 }
 0x662   :  { %v1062_v0 = vpop.f32.mrf.mxu0 }
 0x663   :  { %v1063_v1 = vadd.f32 %v1062_v0, %v1035_v63 }
 0x665   :  { %1066 = vrot.lane.b32.xlu2 %v1063_v1, %s1434_s22 }
 0x687   :  { %v1098_v6 = vpop.f32.mrf.mxu1 }
 0x688   :  { %v1099_v7 = vadd.f32 %v1243_v5, %v1098_v6 }
 0x68a   :  { %v1104_v25 = vadd.f32 %v1099_v7, %v1516_v4 }
 0x68c   :  { %v1106_v3 = vsel %vm108_vm0, %v1104_v25, 0.0 }
 0x68e   :  { %1107 = vadd.xlane.f32.xlu2 %v1106_v3 }
 0x6bf   :  { %v1067_v11 = vpop.permute.xlu2 %1066 }
 0x6c0   :  { %v1069_v10 = vsel %vm279_vm7, %v965_v9, %v1067_v11 }
 0x6c1   :  { %1219 = vmatmul.msk.f32.gmra.mxu1 %vm108_vm0, %v1069_v10 }
 0x701   :  { %v1108_v12 = vpop.xlane.xlu2 %1107 }
 0x702   :  { %v1112_v13 = vmul.f32 %v1108_v12, %v1547_v22 }
 0x704   :  { %v1114_v14 = vsub.f32 %v1104_v25, %v1112_v13 }
 0x706   :  { %v1116_v15 = vmul.f32 %v1114_v14, %v1114_v14 }
 0x708   :  { %v1118_v16 = vsel %vm108_vm0, %v1116_v15, 0.0 }
 0x709   :  { %1119 = vadd.xlane.f32.xlu1 %v1118_v16 }
 0x73e   :  { %v1101_v17 = vpop.f32.mrf.mxu1 }
 0x73f   :  { %v1102_v18 = vadd.f32 %v1243_v5, %v1101_v17 }
 0x741   :  { %v1105_v4 = vadd.f32 %v1102_v18, %v1526_v8  ;;  %v1244_v8 = vld [vmem:[%s1724_s8 + $0x3] ss:$0 sm:$0xff]  ;;  %s1435_s8 = smov [#allocation10]  }
 0x742   :  { %s1162_s27 = sshll.u32 %s1435_s8, 4  ;;  %s1163_s27 = int_to_ptr.vmem [resolvable:$true] %s1162_s27 }
 0x743   :  { %v1109_v62 = vsel %vm108_vm0, %v1105_v4, 0.0 }
 0x744   :  { %1110 = vadd.xlane.f32.xlu0 %v1109_v62 }
 0x77c   :  { %v1120_v19 = vpop.xlane.xlu1 %1119 }
 0x77d   :  { %v1124_v20 = vmul.f32 %v1120_v19, %v1547_v22 }
 0x77f   :  { %v1126_v21 = vadd.f32 1e-12, %v1124_v20 }
 0x781   :  { %1290 = vrsqrt.f32 %v1126_v21  ;;  %vm1134_vm10 = vweird.f32 %v1126_v21 }
 0x787   :  { %v1291_v23 = vpop.eup %1290 }
 0x788   :  { %v1129_v45 = vmul.f32 %v1291_v23, %v1126_v21  ;;  %vm1135_vm9 = vweird.f32 %v1291_v23 }
 0x789   :  { %vm1136_vm11 = vmor %vm1134_vm10, %vm1135_vm9 }
 0x78a   :  { %v1130_v24 = vmul.f32 %v1291_v23, %v1129_v45 }
 0x78c   :  { %v1131_v26 = vmul.f32 0.5, %v1130_v24 }
 0x78e   :  { %v1132_v27 = vsub.f32 1.5, %v1131_v26 }
 0x790   :  { %v1133_v28 = vmul.f32 %v1291_v23, %v1132_v27 }
 0x792   :  { %v1137_v30 = vsel %vm1136_vm11, %v1291_v23, %v1133_v28 }
 0x793   :  { %v1148_v31 = vmul.f32 %v1137_v30, %v1114_v14 }
 0x795   :  { %v1151_v33 = vmul.f32 %v1244_v8, %v1148_v31 }
 0x797   :  { %v1154_v34 = vadd.f32 %v1245_v32, %v1151_v33 }
 0x799   :  { %1156 = vst.msk [vmem:[#allocation10] sm:$0xff] %vm108_vm0, %v1154_v34 }
 0x7b7   :  { %v1111_v35 = vpop.xlane.xlu0 %1110 }
 0x7b8   :  { %v1113_v36 = vmul.f32 %v1111_v35, %v1547_v22 }
 0x7ba   :  { %v1115_v37 = vsub.f32 %v1105_v4, %v1113_v36 }
 0x7bc   :  { %v1117_v38 = vmul.f32 %v1115_v37, %v1115_v37 }
 0x7be   :  { %v1121_v39 = vsel %vm108_vm0, %v1117_v38, 0.0 }
 0x7bf   :  { %1122 = vadd.xlane.f32.xlu2 %v1121_v39 }
 0x832   :  { %v1123_v40 = vpop.xlane.xlu2 %1122 }
 0x833   :  { %v1125_v41 = vmul.f32 %v1123_v40, %v1547_v22 }
 0x835   :  { %v1127_v42 = vadd.f32 1e-12, %v1125_v41 }
 0x837   :  { %1292 = vrsqrt.f32 %v1127_v42  ;;  %vm1144_vm13 = vweird.f32 %v1127_v42 }
 0x83d   :  { %v1293_v29 = vpop.eup %1292 }
 0x83e   :  { %v1139_v43 = vmul.f32 %v1293_v29, %v1127_v42  ;;  %vm1145_vm12 = vweird.f32 %v1293_v29 }
 0x83f   :  { %vm1146_vm14 = vmor %vm1144_vm13, %vm1145_vm12 }
 0x840   :  { %v1140_v44 = vmul.f32 %v1293_v29, %v1139_v43 }
 0x842   :  { %v1141_v46 = vmul.f32 0.5, %v1140_v44 }
 0x844   :  { %v1142_v47 = vsub.f32 1.5, %v1141_v46 }
 0x846   :  { %v1143_v48 = vmul.f32 %v1293_v29, %v1142_v47 }
 0x848   :  { %v1147_v49 = vsel %vm1146_vm14, %v1293_v29, %v1143_v48 }
 0x849   :  { %v1149_v50 = vmul.f32 %v1147_v49, %v1115_v37 }
 0x84b   :  { %v1152_v22 = vmul.f32 %v1244_v8, %v1149_v50 }
 0x84d   :  { %v1155_v51 = vadd.f32 %v1245_v32, %v1152_v22 }
 0x84f   :  { %1157 = vst.msk [vmem:[#allocation10 + $0x8] sm:$0xff] %vm108_vm0, %v1155_v51 }
 0x850   :  { %1170 = dma.vmem_to_hbm [thread:$0]  %s1163_s27, 256, %s1165_s29, [#allocation4], %s1424_s19, %s1424_s19, %s1425_s20  }
 0x851   :  { %1420 = dma.done.wait [#allocation4], 256  }
 0x852   :  { %1421 = vsyncadd [#allocation4], 4294967040 }
 0x853   :  { %1175 = vsyncpa [#allocation3], 1 }
 0x854   :  { %1176 = vsyncpa [#allocation6], 1 }
 0x855   :  { %1177 = vsyncpa [#allocation9], 1 }
 0x856   :  { %1178 = vsyncpa [#allocation4], 1 }

</bundles_post_ra>
